<compile_context>
chip_gen: v7x
topology: tpu7x:2x2x1
jax: 0.10.0
libtpu: 0.0.40
codegen_flags: <defaults>
</compile_context>

<pallas_src>
import math

import jax
import jax.numpy as jnp
from jax import lax
from jax.experimental import pallas as pl
from jax.experimental.pallas import tpu as pltpu
from jax.scipy.special import erf as _erf_ref


# ---------------------------------------------------------------------------
# Elementwise helpers (run inside the kernel)
# ---------------------------------------------------------------------------
def _erf_approx(x):
    # Abramowitz & Stegun 7.1.26 rational approximation (|err| < 1.5e-7); the
    # reciprocal is routed to the EUP (otherwise-idle slot) per the review.
    sign = jnp.where(x >= 0.0, 1.0, -1.0)
    a = jnp.abs(x)
    t = pl.reciprocal(1.0 + 0.3275911 * a, approx=True)
    poly = t * (0.254829592
                + t * (-0.284496736
                       + t * (1.421413741
                              + t * (-1.453152027
                                     + t * 1.061405429))))
    return sign * (1.0 - poly * jnp.exp(-a * a))


def _gelu_erf(x):
    # erf-based GELU (torch.nn.GELU() default), up to the erf approximation.
    return 0.5 * x * (1.0 + _erf_approx(x * (1.0 / math.sqrt(2.0))))


# ---------------------------------------------------------------------------
# Weight "lifting": fold the (h, t) axes into the contraction so every conv
# becomes one well-shaped MXU matmul on the (h, t, c) flattened lane axis.
# Done ONCE per parameter set (outside the jitted forward).
# ---------------------------------------------------------------------------
def _lift_spatial(ws, H, T):
    """ws: (3, 3, cin, cmid) -> (3*H*T*cin, H*T*cmid).

    Row blocks are ordered kw = 0, 1, 2 (i.e. x[w-1], x[w], x[w+1]); within a
    block rows/cols are (h, t, c) flattened h-major, c-minor.  The kh shifts
    and their zero 'same' padding are encoded as bands over H; the temporal
    axis is block-diagonal (kernel size 1 along t).
    """
    eye_t = jnp.eye(T, dtype=jnp.float32)
    blocks = []
    for kw in range(3):
        bkw = jnp.zeros((H * T * ws.shape[2], H * T * ws.shape[3]), jnp.float32)
        for kh in range(3):
            band_h = jnp.eye(H, k=1 - kh, dtype=jnp.float32)  # h_in = h_out+kh-1
            bkw = bkw + jnp.kron(
                band_h, jnp.kron(eye_t, ws[kw, kh].astype(jnp.float32)))
        blocks.append(bkw)
    return jnp.concatenate(blocks, axis=0)


def _lift_temporal(wt, H, T):
    """wt: (3, cmid, cout) -> (H*T*cmid, H*T*cout): banded over t, blockdiag over h."""
    cmid, cout = wt.shape[1], wt.shape[2]
    bt = jnp.zeros((T * cmid, T * cout), jnp.float32)
    for k in range(3):
        band_t = jnp.eye(T, k=1 - k, dtype=jnp.float32)        # t_in = t_out+k-1
        bt = bt + jnp.kron(band_t, wt[k].astype(jnp.float32))
    return jnp.kron(jnp.eye(H, dtype=jnp.float32), bt)


def _lift_pointwise(w2, H, T):
    """w2: (cf, 1) -> (H*T*cf, H*T), block-diagonal over (h, t)."""
    return jnp.kron(jnp.eye(H * T, dtype=jnp.float32), w2.astype(jnp.float32))


def lift_params(params, H, T):
    """Precompute the MXU-lifted bf16 weights (hoisted out of the forward)."""
    blocks = []
    for (ws, bs, wt, bt) in params["blocks"]:
        blocks.append((
            _lift_spatial(ws, H, T).astype(jnp.bfloat16),
            jnp.tile(bs, (1, H * T)).astype(jnp.float32),
            _lift_temporal(wt, H, T).astype(jnp.bfloat16),
            jnp.tile(bt, (1, H * T)).astype(jnp.float32),
        ))
    wp = _lift_pointwise(params["w2"], H, T).astype(jnp.bfloat16)
    bp = jnp.tile(params["b2"], (1, H * T)).astype(jnp.float32)
    return {"blocks": blocks, "wp": wp, "bp": bp}


# ---------------------------------------------------------------------------
# Single fused pallas_call for the whole conv stack
# ---------------------------------------------------------------------------
def fused_separated_stack(xk, lifted):
    """xk: (B, W, H*T*Cin0) bf16 -> (B, W, H*T) f32 (conv stack + final 1x1x1)."""
    B, W, _ = xk.shape
    blocks = lifted["blocks"]
    wp, bp = lifted["wp"], lifted["bp"]
    n_blocks = len(blocks)
    n_out = wp.shape[1]                     # == H*T

    def kernel(*refs):
        x_ref = refs[0]
        w_refs = refs[1:1 + 4 * n_blocks]
        wp_ref = refs[1 + 4 * n_blocks]
        bp_ref = refs[2 + 4 * n_blocks]
        o_ref = refs[3 + 4 * n_blocks]

        # 0/1 shift matrices implementing the +-1 W shifts of the (3,3,1)
        # conv; the missing boundary rows give the zero 'same' pad for free.
        r = lax.broadcasted_iota(jnp.int32, (W, W), 0)
        c = lax.broadcasted_iota(jnp.int32, (W, W), 1)
        s_up = (c == r - 1).astype(jnp.bfloat16)    # s_up @ x -> x[w-1]
        s_dn = (c == r + 1).astype(jnp.bfloat16)    # s_dn @ x -> x[w+1]

        cur = x_ref[...]                            # (W, H*T*Cin) bf16
        for i in range(n_blocks):
            ws_ref, bs_ref, wt_ref, bt_ref = w_refs[4 * i:4 * i + 4]

            up = jnp.dot(s_up, cur, preferred_element_type=jnp.float32)
            dn = jnp.dot(s_dn, cur, preferred_element_type=jnp.float32)
            # Lane-tile-aligned concat: each piece is a multiple of 128 lanes.
            xcat = jnp.concatenate(
                [up.astype(jnp.bfloat16), cur, dn.astype(jnp.bfloat16)],
                axis=-1)                            # (W, 3*H*T*Cin)

            # (3,3,1) conv: ONE MXU matmul, K = 3*H*T*Cin.
            mid = jnp.dot(xcat, ws_ref[...],
                          preferred_element_type=jnp.float32) + bs_ref[...]

            # (1,1,3) conv as one banded matmul (temporal 'same' pad encoded),
            # then erf-GELU as the f32 epilogue.
            y = jnp.dot(mid.astype(jnp.bfloat16), wt_ref[...],
                        preferred_element_type=jnp.float32) + bt_ref[...]
            cur = _gelu_erf(y).astype(jnp.bfloat16)

        # Fused final Conv3d(Cf -> 1, kernel (1,1,1)) + squeeze: the last
        # GELU output never leaves vregs/VMEM.
        out = jnp.dot(cur, wp_ref[...],
                      preferred_element_type=jnp.float32) + bp_ref[...]
        o_ref[...] = out.astype(o_ref.dtype)

    def _full(arr):                                  # whole (2-D) array resident
        return pl.BlockSpec(arr.shape, lambda b: (0, 0))

    in_specs = [pl.BlockSpec((None, W, xk.shape[2]), lambda b: (b, 0, 0))]
    args = [xk]
    for blk in blocks:
        for arr in blk:
            in_specs.append(_full(arr))
            args.append(arr)
    in_specs += [_full(wp), _full(bp)]
    args += [wp, bp]

    return pl.pallas_call(
        kernel,
        out_shape=jax.ShapeDtypeStruct((B, W, n_out), jnp.float32),
        grid=(B,),
        in_specs=in_specs,
        out_specs=pl.BlockSpec((None, W, n_out), lambda b: (b, 0, 0)),
        compiler_params=pltpu.CompilerParams(
            dimension_semantics=("parallel",),
            vmem_limit_bytes=48 * 1024 * 1024,   # <= v7x 64 MiB/TC, < v5e/v6e 128 MiB
        ),
    )(*args)


# ---------------------------------------------------------------------------
# Parameter construction (mirrors the reference __init__ channel schedule and
# PyTorch Conv3d default init)
# ---------------------------------------------------------------------------
def _uinit(key, shape, fan_in):
    bound = 1.0 / math.sqrt(fan_in)
    return jax.random.uniform(key, shape, jnp.float32, -bound, bound)


def init_params(key, n_layer):
    specs = [(2, 2, 2)]
    in_c, tmp_c, out_c = 2, 4, 8
    for _ in range(n_layer - 1):
        specs.append((in_c, tmp_c, out_c))
        in_c = out_c
        tmp_c = in_c * 2
        out_c = tmp_c * 2
    final_in = in_c

    blocks = []
    for (cin, cmid, cout) in specs:
        key, k1, k2, k3, k4 = jax.random.split(key, 5)
        fan_s = cin * 3 * 3 * 1
        fan_t = cmid * 1 * 1 * 3
        ws = _uinit(k1, (3, 3, cin, cmid), fan_s)    # Conv3d kernel (3,3,1)
        bs = _uinit(k2, (1, cmid), fan_s)
        wt = _uinit(k3, (3, cmid, cout), fan_t)      # Conv3d kernel (1,1,3)
        bt = _uinit(k4, (1, cout), fan_t)
        blocks.append((ws, bs, wt, bt))

    key, k5, k6 = jax.random.split(key, 3)
    w2 = _uinit(k5, (final_in, 1), final_in)         # Conv3d kernel (1,1,1), C->1
    b2 = _uinit(k6, (1, 1), final_in)
    return {"blocks": blocks, "w2": w2, "b2": b2}


# ---------------------------------------------------------------------------
# Forward pass of `separated` (conv stack + squeeze + rearrange)
# ---------------------------------------------------------------------------
def separated_forward(x, lifted):
    """x: (B, 2, W, H, T), PyTorch Conv3d layout.  Returns (B, T, W, H)."""
    B, C0, W, H, T = x.shape
    # Lane-dense relayout of the 2-channel input: (h, t, c) flattened h-major,
    # c-minor onto the lane axis -> 128 lanes at the test sizes.
    xk = jnp.transpose(x, (0, 2, 3, 4, 1)).reshape(B, W, H * T * C0)
    xk = xk.astype(jnp.bfloat16)
    y = fused_separated_stack(xk, lifted)            # (B, W, H*T) f32
    y = y.reshape(B, W, H, T)
    # TODO(synk): PyramidVisionTransformer (self.pvt) is not defined in the
    # reference source; return the pre-PVT tensor rearranged to (b, t, w, h).
    return jnp.transpose(y, (0, 3, 1, 2))


# ---------------------------------------------------------------------------
# Pure-JAX (non-Pallas) reference for self-checking
# ---------------------------------------------------------------------------
def _reference_forward(x, params):
    B, C, W, H, T = x.shape
    hi = lax.Precision.HIGHEST
    xr = jnp.transpose(x, (0, 2, 3, 4, 1)).astype(jnp.float32)   # (B,W,H,T,C)
    for (ws, bs, wt, bt) in params["blocks"]:
        cmid = ws.shape[-1]
        xp = jnp.pad(xr, ((0, 0), (1, 1), (1, 1), (0, 0), (0, 0)))
        y = jnp.zeros(xr.shape[:-1] + (cmid,), jnp.float32)
        for kw in range(3):
            for kh in range(3):
                y = y + jnp.einsum("bwhtc,cd->bwhtd",
                                   xp[:, kw:kw + W, kh:kh + H], ws[kw, kh],
                                   precision=hi)
        y = y + bs[0]
        cout = wt.shape[-1]
        yp = jnp.pad(y, ((0, 0), (0, 0), (0, 0), (1, 1), (0, 0)))
        z = jnp.zeros(y.shape[:-1] + (cout,), jnp.float32)
        for kt in range(3):
            z = z + jnp.einsum("bwhtc,cd->bwhtd",
                               yp[:, :, :, kt:kt + T], wt[kt], precision=hi)
        z = z + bt[0]
        xr = 0.5 * z * (1.0 + _erf_ref(z * (1.0 / math.sqrt(2.0))))  # exact GELU
    y = (jnp.einsum("bwhtc,cd->bwhtd", xr, params["w2"], precision=hi)
         + params["b2"][0])
    return jnp.transpose(y[..., 0], (0, 3, 1, 2))                    # (B,T,W,H)


if __name__ == "__main__":
    B, W, H, T = 2, 8, 8, 8          # H, T multiples of 8 (sublane-aligned)
    n_layer = 2

    key = jax.random.PRNGKey(0)
    kx, kp = jax.random.split(key)
    x = jax.random.normal(kx, (B, 2, W, H, T), jnp.float32)
    params = init_params(kp, n_layer)
    lifted = lift_params(params, H, T)   # kron lifting hoisted out of the forward

    fwd = jax.jit(separated_forward)
    out = fwd(x, lifted)
    jax.block_until_ready(out)
    assert out.shape == (B, T, W, H), out.shape
    assert bool(jnp.all(jnp.isfinite(out)))

    ref = _reference_forward(x, params)
    max_err = float(jnp.max(jnp.abs(out - ref)))
    # bf16 MXU operands + erf/reciprocal approximations: budget a few e-3.
    assert max_err < 3e-2, f"mismatch vs reference: max abs err = {max_err}"
    print("KERNEL_OK")
</pallas_src>

<mosaic_0001>
module attributes {stable_mosaic.version = 11 : i64} {
  func.func @kernel(%arg0: i32, %arg1: memref<1x8x128xbf16, #tpu.memory_space<vmem>>, %arg2: memref<384x128xbf16, #tpu.memory_space<vmem>>, %arg3: memref<1x128xf32, #tpu.memory_space<vmem>>, %arg4: memref<128x128xbf16, #tpu.memory_space<vmem>>, %arg5: memref<1x128xf32, #tpu.memory_space<vmem>>, %arg6: memref<384x256xbf16, #tpu.memory_space<vmem>>, %arg7: memref<1x256xf32, #tpu.memory_space<vmem>>, %arg8: memref<256x512xbf16, #tpu.memory_space<vmem>>, %arg9: memref<1x512xf32, #tpu.memory_space<vmem>>, %arg10: memref<512x64xbf16, #tpu.memory_space<vmem>>, %arg11: memref<1x64xf32, #tpu.memory_space<vmem>>, %arg12: memref<1x8x64xf32, #tpu.memory_space<vmem>>) attributes {dimension_semantics = [#tpu.dimension_semantics<parallel>], iteration_bounds = array<i64: 2>, scalar_prefetch = 0 : i64, scratch_operands = 0 : i64, tpu.core_type = #tpu.core_type<tc>, window_params = [{transform_indices = @transform_0, window_bounds = array<i64: 1, 8, 128>}, {pipeline_mode = #tpu.pipeline_mode<synchronous>, transform_indices = @transform_1, window_bounds = array<i64: 384, 128>}, {pipeline_mode = #tpu.pipeline_mode<synchronous>, transform_indices = @transform_2, window_bounds = array<i64: 1, 128>}, {pipeline_mode = #tpu.pipeline_mode<synchronous>, transform_indices = @transform_3, window_bounds = array<i64: 128, 128>}, {pipeline_mode = #tpu.pipeline_mode<synchronous>, transform_indices = @transform_4, window_bounds = array<i64: 1, 128>}, {pipeline_mode = #tpu.pipeline_mode<synchronous>, transform_indices = @transform_5, window_bounds = array<i64: 384, 256>}, {pipeline_mode = #tpu.pipeline_mode<synchronous>, transform_indices = @transform_6, window_bounds = array<i64: 1, 256>}, {pipeline_mode = #tpu.pipeline_mode<synchronous>, transform_indices = @transform_7, window_bounds = array<i64: 256, 512>}, {pipeline_mode = #tpu.pipeline_mode<synchronous>, transform_indices = @transform_8, window_bounds = array<i64: 1, 512>}, {pipeline_mode = #tpu.pipeline_mode<synchronous>, transform_indices = @transform_9, window_bounds = array<i64: 512, 64>}, {pipeline_mode = #tpu.pipeline_mode<synchronous>, transform_indices = @transform_10, window_bounds = array<i64: 1, 64>}, {transform_indices = @transform_11, window_bounds = array<i64: 1, 8, 64>}]} {
    %0 = tpu.iota {dimensions = array<i32: 0>} : vector<8x8xi32>
    %1 = tpu.iota {dimensions = array<i32: 1>} : vector<8x8xi32>
    %c1_i32 = arith.constant 1 : i32
    %2 = vector.broadcast %c1_i32 : i32 to vector<8x8xi32>
    %3 = arith.subi %0, %2 : vector<8x8xi32>
    %4 = arith.cmpi eq, %1, %3 : vector<8x8xi32>
    %5 = arith.extui %4 : vector<8x8xi1> to vector<8x8xi32>
    %6 = arith.sitofp %5 : vector<8x8xi32> to vector<8x8xf32>
    %7 = arith.truncf %6 : vector<8x8xf32> to vector<8x8xbf16>
    %c1_i32_0 = arith.constant 1 : i32
    %8 = vector.broadcast %c1_i32_0 : i32 to vector<8x8xi32>
    %9 = arith.addi %0, %8 : vector<8x8xi32>
    %10 = arith.cmpi eq, %1, %9 : vector<8x8xi32>
    %11 = arith.extui %10 : vector<8x8xi1> to vector<8x8xi32>
    %12 = arith.sitofp %11 : vector<8x8xi32> to vector<8x8xf32>
    %13 = arith.truncf %12 : vector<8x8xf32> to vector<8x8xbf16>
    %c0 = arith.constant 0 : index
    %c0_1 = arith.constant 0 : index
    %c0_2 = arith.constant 0 : index
    %14 = vector.load %arg1[%c0, %c0_1, %c0_2] : memref<1x8x128xbf16, #tpu.memory_space<vmem>>, vector<1x8x128xbf16>
    %15 = vector.shape_cast %14 : vector<1x8x128xbf16> to vector<8x128xbf16>
    %cst = arith.constant dense<0.000000e+00> : vector<8x128xf32>
    %16 = tpu.matmul %7, %15, %cst {dimension_numbers = #tpu.dot_dimension_numbers<[1], [0], [0], [1], [0, 0, 1, 1], [], []>} : vector<8x8xbf16>, vector<8x128xbf16>, vector<8x128xf32> -> vector<8x128xf32>
    %cst_3 = arith.constant dense<0.000000e+00> : vector<8x128xf32>
    %17 = tpu.matmul %13, %15, %cst_3 {dimension_numbers = #tpu.dot_dimension_numbers<[1], [0], [0], [1], [0, 0, 1, 1], [], []>} : vector<8x8xbf16>, vector<8x128xbf16>, vector<8x128xf32> -> vector<8x128xf32>
    %18 = arith.truncf %16 : vector<8x128xf32> to vector<8x128xbf16>
    %19 = arith.truncf %17 : vector<8x128xf32> to vector<8x128xbf16>
    %20 = tpu.concatenate %18, %15, %19 in 1 : vector<8x128xbf16>, vector<8x128xbf16>, vector<8x128xbf16> -> vector<8x384xbf16>
    %c0_4 = arith.constant 0 : index
    %c0_5 = arith.constant 0 : index
    %21 = vector.load %arg2[%c0_4, %c0_5] : memref<384x128xbf16, #tpu.memory_space<vmem>>, vector<384x128xbf16>
    %cst_6 = arith.constant dense<0.000000e+00> : vector<8x128xf32>
    %22 = tpu.matmul %20, %21, %cst_6 {dimension_numbers = #tpu.dot_dimension_numbers<[1], [0], [0], [1], [0, 0, 1, 1], [], []>} : vector<8x384xbf16>, vector<384x128xbf16>, vector<8x128xf32> -> vector<8x128xf32>
    %c0_7 = arith.constant 0 : index
    %c0_8 = arith.constant 0 : index
    %23 = vector.load %arg3[%c0_7, %c0_8] : memref<1x128xf32, #tpu.memory_space<vmem>>, vector<1x128xf32>
    %24 = vector.broadcast %23 : vector<1x128xf32> to vector<8x128xf32>
    %25 = arith.addf %22, %24 : vector<8x128xf32>
    %26 = arith.truncf %25 : vector<8x128xf32> to vector<8x128xbf16>
    %c0_9 = arith.constant 0 : index
    %c0_10 = arith.constant 0 : index
    %27 = vector.load %arg4[%c0_9, %c0_10] : memref<128x128xbf16, #tpu.memory_space<vmem>>, vector<128x128xbf16>
    %cst_11 = arith.constant dense<0.000000e+00> : vector<8x128xf32>
    %28 = tpu.matmul %26, %27, %cst_11 {dimension_numbers = #tpu.dot_dimension_numbers<[1], [0], [0], [1], [0, 0, 1, 1], [], []>} : vector<8x128xbf16>, vector<128x128xbf16>, vector<8x128xf32> -> vector<8x128xf32>
    %c0_12 = arith.constant 0 : index
    %c0_13 = arith.constant 0 : index
    %29 = vector.load %arg5[%c0_12, %c0_13] : memref<1x128xf32, #tpu.memory_space<vmem>>, vector<1x128xf32>
    %30 = vector.broadcast %29 : vector<1x128xf32> to vector<8x128xf32>
    %31 = arith.addf %28, %30 : vector<8x128xf32>
    %cst_14 = arith.constant 5.000000e-01 : f32
    %32 = vector.broadcast %cst_14 : f32 to vector<8x128xf32>
    %33 = arith.mulf %32, %31 : vector<8x128xf32>
    %cst_15 = arith.constant 0.707106769 : f32
    %34 = vector.broadcast %cst_15 : f32 to vector<8x128xf32>
    %35 = arith.mulf %31, %34 : vector<8x128xf32>
    %cst_16 = arith.constant 0.000000e+00 : f32
    %36 = vector.broadcast %cst_16 : f32 to vector<8x128xf32>
    %37 = arith.cmpf oge, %35, %36 : vector<8x128xf32>
    %cst_17 = arith.constant 1.000000e+00 : f32
    %cst_18 = arith.constant -1.000000e+00 : f32
    %38 = vector.broadcast %cst_17 : f32 to vector<8x128xf32>
    %39 = vector.broadcast %cst_18 : f32 to vector<8x128xf32>
    %40 = arith.select %37, %38, %39 : vector<8x128xi1>, vector<8x128xf32>
    %41 = math.absf %35 : vector<8x128xf32>
    %cst_19 = arith.constant 0.327591091 : f32
    %42 = vector.broadcast %cst_19 : f32 to vector<8x128xf32>
    %43 = arith.mulf %42, %41 : vector<8x128xf32>
    %cst_20 = arith.constant 1.000000e+00 : f32
    %44 = vector.broadcast %cst_20 : f32 to vector<8x128xf32>
    %45 = arith.addf %44, %43 : vector<8x128xf32>
    %46 = tpu.reciprocal %45 {approx = true} : vector<8x128xf32> -> vector<8x128xf32>
    %cst_21 = arith.constant 1.06140542 : f32
    %47 = vector.broadcast %cst_21 : f32 to vector<8x128xf32>
    %48 = arith.mulf %46, %47 : vector<8x128xf32>
    %cst_22 = arith.constant -1.45315206 : f32
    %49 = vector.broadcast %cst_22 : f32 to vector<8x128xf32>
    %50 = arith.addf %49, %48 : vector<8x128xf32>
    %51 = arith.mulf %46, %50 : vector<8x128xf32>
    %cst_23 = arith.constant 1.42141378 : f32
    %52 = vector.broadcast %cst_23 : f32 to vector<8x128xf32>
    %53 = arith.addf %52, %51 : vector<8x128xf32>
    %54 = arith.mulf %46, %53 : vector<8x128xf32>
    %cst_24 = arith.constant -0.284496725 : f32
    %55 = vector.broadcast %cst_24 : f32 to vector<8x128xf32>
    %56 = arith.addf %55, %54 : vector<8x128xf32>
    %57 = arith.mulf %46, %56 : vector<8x128xf32>
    %cst_25 = arith.constant 0.254829586 : f32
    %58 = vector.broadcast %cst_25 : f32 to vector<8x128xf32>
    %59 = arith.addf %58, %57 : vector<8x128xf32>
    %60 = arith.mulf %46, %59 : vector<8x128xf32>
    %cst_26 = arith.constant 0.000000e+00 : f32
    %61 = vector.broadcast %cst_26 : f32 to vector<8x128xf32>
    %62 = arith.subf %61, %41 : vector<8x128xf32>
    %63 = arith.mulf %62, %41 : vector<8x128xf32>
    %64 = math.exp %63 : vector<8x128xf32>
    %65 = arith.mulf %60, %64 : vector<8x128xf32>
    %cst_27 = arith.constant 1.000000e+00 : f32
    %66 = vector.broadcast %cst_27 : f32 to vector<8x128xf32>
    %67 = arith.subf %66, %65 : vector<8x128xf32>
    %68 = arith.mulf %40, %67 : vector<8x128xf32>
    %cst_28 = arith.constant 1.000000e+00 : f32
    %69 = vector.broadcast %cst_28 : f32 to vector<8x128xf32>
    %70 = arith.addf %69, %68 : vector<8x128xf32>
    %71 = arith.mulf %33, %70 : vector<8x128xf32>
    %72 = arith.truncf %71 : vector<8x128xf32> to vector<8x128xbf16>
    %cst_29 = arith.constant dense<0.000000e+00> : vector<8x128xf32>
    %73 = tpu.matmul %7, %72, %cst_29 {dimension_numbers = #tpu.dot_dimension_numbers<[1], [0], [0], [1], [0, 0, 1, 1], [], []>} : vector<8x8xbf16>, vector<8x128xbf16>, vector<8x128xf32> -> vector<8x128xf32>
    %cst_30 = arith.constant dense<0.000000e+00> : vector<8x128xf32>
    %74 = tpu.matmul %13, %72, %cst_30 {dimension_numbers = #tpu.dot_dimension_numbers<[1], [0], [0], [1], [0, 0, 1, 1], [], []>} : vector<8x8xbf16>, vector<8x128xbf16>, vector<8x128xf32> -> vector<8x128xf32>
    %75 = arith.truncf %73 : vector<8x128xf32> to vector<8x128xbf16>
    %76 = arith.truncf %74 : vector<8x128xf32> to vector<8x128xbf16>
    %77 = tpu.concatenate %75, %72, %76 in 1 : vector<8x128xbf16>, vector<8x128xbf16>, vector<8x128xbf16> -> vector<8x384xbf16>
    %c0_31 = arith.constant 0 : index
    %c0_32 = arith.constant 0 : index
    %78 = vector.load %arg6[%c0_31, %c0_32] : memref<384x256xbf16, #tpu.memory_space<vmem>>, vector<384x256xbf16>
    %cst_33 = arith.constant dense<0.000000e+00> : vector<8x256xf32>
    %79 = tpu.matmul %77, %78, %cst_33 {dimension_numbers = #tpu.dot_dimension_numbers<[1], [0], [0], [1], [0, 0, 1, 1], [], []>} : vector<8x384xbf16>, vector<384x256xbf16>, vector<8x256xf32> -> vector<8x256xf32>
    %c0_34 = arith.constant 0 : index
    %c0_35 = arith.constant 0 : index
    %80 = vector.load %arg7[%c0_34, %c0_35] : memref<1x256xf32, #tpu.memory_space<vmem>>, vector<1x256xf32>
    %81 = vector.broadcast %80 : vector<1x256xf32> to vector<8x256xf32>
    %82 = arith.addf %79, %81 : vector<8x256xf32>
    %83 = arith.truncf %82 : vector<8x256xf32> to vector<8x256xbf16>
    %c0_36 = arith.constant 0 : index
    %c0_37 = arith.constant 0 : index
    %84 = vector.load %arg8[%c0_36, %c0_37] : memref<256x512xbf16, #tpu.memory_space<vmem>>, vector<256x512xbf16>
    %cst_38 = arith.constant dense<0.000000e+00> : vector<8x512xf32>
    %85 = tpu.matmul %83, %84, %cst_38 {dimension_numbers = #tpu.dot_dimension_numbers<[1], [0], [0], [1], [0, 0, 1, 1], [], []>} : vector<8x256xbf16>, vector<256x512xbf16>, vector<8x512xf32> -> vector<8x512xf32>
    %c0_39 = arith.constant 0 : index
    %c0_40 = arith.constant 0 : index
    %86 = vector.load %arg9[%c0_39, %c0_40] : memref<1x512xf32, #tpu.memory_space<vmem>>, vector<1x512xf32>
    %87 = vector.broadcast %86 : vector<1x512xf32> to vector<8x512xf32>
    %88 = arith.addf %85, %87 : vector<8x512xf32>
    %cst_41 = arith.constant 5.000000e-01 : f32
    %89 = vector.broadcast %cst_41 : f32 to vector<8x512xf32>
    %90 = arith.mulf %89, %88 : vector<8x512xf32>
    %cst_42 = arith.constant 0.707106769 : f32
    %91 = vector.broadcast %cst_42 : f32 to vector<8x512xf32>
    %92 = arith.mulf %88, %91 : vector<8x512xf32>
    %cst_43 = arith.constant 0.000000e+00 : f32
    %93 = vector.broadcast %cst_43 : f32 to vector<8x512xf32>
    %94 = arith.cmpf oge, %92, %93 : vector<8x512xf32>
    %cst_44 = arith.constant 1.000000e+00 : f32
    %cst_45 = arith.constant -1.000000e+00 : f32
    %95 = vector.broadcast %cst_44 : f32 to vector<8x512xf32>
    %96 = vector.broadcast %cst_45 : f32 to vector<8x512xf32>
    %97 = arith.select %94, %95, %96 : vector<8x512xi1>, vector<8x512xf32>
    %98 = math.absf %92 : vector<8x512xf32>
    %cst_46 = arith.constant 0.327591091 : f32
    %99 = vector.broadcast %cst_46 : f32 to vector<8x512xf32>
    %100 = arith.mulf %99, %98 : vector<8x512xf32>
    %cst_47 = arith.constant 1.000000e+00 : f32
    %101 = vector.broadcast %cst_47 : f32 to vector<8x512xf32>
    %102 = arith.addf %101, %100 : vector<8x512xf32>
    %103 = tpu.reciprocal %102 {approx = true} : vector<8x512xf32> -> vector<8x512xf32>
    %cst_48 = arith.constant 1.06140542 : f32
    %104 = vector.broadcast %cst_48 : f32 to vector<8x512xf32>
    %105 = arith.mulf %103, %104 : vector<8x512xf32>
    %cst_49 = arith.constant -1.45315206 : f32
    %106 = vector.broadcast %cst_49 : f32 to vector<8x512xf32>
    %107 = arith.addf %106, %105 : vector<8x512xf32>
    %108 = arith.mulf %103, %107 : vector<8x512xf32>
    %cst_50 = arith.constant 1.42141378 : f32
    %109 = vector.broadcast %cst_50 : f32 to vector<8x512xf32>
    %110 = arith.addf %109, %108 : vector<8x512xf32>
    %111 = arith.mulf %103, %110 : vector<8x512xf32>
    %cst_51 = arith.constant -0.284496725 : f32
    %112 = vector.broadcast %cst_51 : f32 to vector<8x512xf32>
    %113 = arith.addf %112, %111 : vector<8x512xf32>
    %114 = arith.mulf %103, %113 : vector<8x512xf32>
    %cst_52 = arith.constant 0.254829586 : f32
    %115 = vector.broadcast %cst_52 : f32 to vector<8x512xf32>
    %116 = arith.addf %115, %114 : vector<8x512xf32>
    %117 = arith.mulf %103, %116 : vector<8x512xf32>
    %cst_53 = arith.constant 0.000000e+00 : f32
    %118 = vector.broadcast %cst_53 : f32 to vector<8x512xf32>
    %119 = arith.subf %118, %98 : vector<8x512xf32>
    %120 = arith.mulf %119, %98 : vector<8x512xf32>
    %121 = math.exp %120 : vector<8x512xf32>
    %122 = arith.mulf %117, %121 : vector<8x512xf32>
    %cst_54 = arith.constant 1.000000e+00 : f32
    %123 = vector.broadcast %cst_54 : f32 to vector<8x512xf32>
    %124 = arith.subf %123, %122 : vector<8x512xf32>
    %125 = arith.mulf %97, %124 : vector<8x512xf32>
    %cst_55 = arith.constant 1.000000e+00 : f32
    %126 = vector.broadcast %cst_55 : f32 to vector<8x512xf32>
    %127 = arith.addf %126, %125 : vector<8x512xf32>
    %128 = arith.mulf %90, %127 : vector<8x512xf32>
    %129 = arith.truncf %128 : vector<8x512xf32> to vector<8x512xbf16>
    %c0_56 = arith.constant 0 : index
    %c0_57 = arith.constant 0 : index
    %130 = vector.load %arg10[%c0_56, %c0_57] : memref<512x64xbf16, #tpu.memory_space<vmem>>, vector<512x64xbf16>
    %cst_58 = arith.constant dense<0.000000e+00> : vector<8x64xf32>
    %131 = tpu.matmul %129, %130, %cst_58 {dimension_numbers = #tpu.dot_dimension_numbers<[1], [0], [0], [1], [0, 0, 1, 1], [], []>} : vector<8x512xbf16>, vector<512x64xbf16>, vector<8x64xf32> -> vector<8x64xf32>
    %c0_59 = arith.constant 0 : index
    %c0_60 = arith.constant 0 : index
    %132 = vector.load %arg11[%c0_59, %c0_60] : memref<1x64xf32, #tpu.memory_space<vmem>>, vector<1x64xf32>
    %133 = vector.broadcast %132 : vector<1x64xf32> to vector<8x64xf32>
    %134 = arith.addf %131, %133 : vector<8x64xf32>
    %c0_61 = arith.constant 0 : index
    %c0_62 = arith.constant 0 : index
    %c0_63 = arith.constant 0 : index
    %135 = vector.load %arg12[%c0_61, %c0_62, %c0_63] : memref<1x8x64xf32, #tpu.memory_space<vmem>>, vector<1x8x64xf32>
    %136 = vector.shape_cast %135 : vector<1x8x64xf32> to vector<8x64xf32>
    %137 = vector.shape_cast %134 : vector<8x64xf32> to vector<1x8x64xf32>
    tpu.vector_store %arg12[%c0_61, %c0_62, %c0_63], %137 {strides = array<i32>} : memref<1x8x64xf32, #tpu.memory_space<vmem>>, vector<1x8x64xf32>,
    return
  }
  func.func @transform_0(%arg0: i32) -> (i32, i32, i32) {
    %c0_i32 = arith.constant 0 : i32
    %c0_i32_0 = arith.constant 0 : i32
    %c0_i32_1 = arith.constant 0 : i32
    return %arg0, %c0_i32, %c0_i32_0 : i32, i32, i32
  }
  func.func @transform_1(%arg0: i32) -> (i32, i32) {
    %c0_i32 = arith.constant 0 : i32
    %c0_i32_0 = arith.constant 0 : i32
    %c0_i32_1 = arith.constant 0 : i32
    return %c0_i32, %c0_i32_0 : i32, i32
  }
  func.func @transform_2(%arg0: i32) -> (i32, i32) {
    %c0_i32 = arith.constant 0 : i32
    %c0_i32_0 = arith.constant 0 : i32
    %c0_i32_1 = arith.constant 0 : i32
    return %c0_i32, %c0_i32_0 : i32, i32
  }
  func.func @transform_3(%arg0: i32) -> (i32, i32) {
    %c0_i32 = arith.constant 0 : i32
    %c0_i32_0 = arith.constant 0 : i32
    %c0_i32_1 = arith.constant 0 : i32
    return %c0_i32, %c0_i32_0 : i32, i32
  }
  func.func @transform_4(%arg0: i32) -> (i32, i32) {
    %c0_i32 = arith.constant 0 : i32
    %c0_i32_0 = arith.constant 0 : i32
    %c0_i32_1 = arith.constant 0 : i32
    return %c0_i32, %c0_i32_0 : i32, i32
  }
  func.func @transform_5(%arg0: i32) -> (i32, i32) {
    %c0_i32 = arith.constant 0 : i32
    %c0_i32_0 = arith.constant 0 : i32
    %c0_i32_1 = arith.constant 0 : i32
    return %c0_i32, %c0_i32_0 : i32, i32
  }
  func.func @transform_6(%arg0: i32) -> (i32, i32) {
    %c0_i32 = arith.constant 0 : i32
    %c0_i32_0 = arith.constant 0 : i32
    %c0_i32_1 = arith.constant 0 : i32
    return %c0_i32, %c0_i32_0 : i32, i32
  }
  func.func @transform_7(%arg0: i32) -> (i32, i32) {
    %c0_i32 = arith.constant 0 : i32
    %c0_i32_0 = arith.constant 0 : i32
    %c0_i32_1 = arith.constant 0 : i32
    return %c0_i32, %c0_i32_0 : i32, i32
  }
  func.func @transform_8(%arg0: i32) -> (i32, i32) {
    %c0_i32 = arith.constant 0 : i32
    %c0_i32_0 = arith.constant 0 : i32
    %c0_i32_1 = arith.constant 0 : i32
    return %c0_i32, %c0_i32_0 : i32, i32
  }
  func.func @transform_9(%arg0: i32) -> (i32, i32) {
    %c0_i32 = arith.constant 0 : i32
    %c0_i32_0 = arith.constant 0 : i32
    %c0_i32_1 = arith.constant 0 : i32
    return %c0_i32, %c0_i32_0 : i32, i32
  }
  func.func @transform_10(%arg0: i32) -> (i32, i32) {
    %c0_i32 = arith.constant 0 : i32
    %c0_i32_0 = arith.constant 0 : i32
    %c0_i32_1 = arith.constant 0 : i32
    return %c0_i32, %c0_i32_0 : i32, i32
  }
  func.func @transform_11(%arg0: i32) -> (i32, i32, i32) {
    %c0_i32 = arith.constant 0 : i32
    %c0_i32_0 = arith.constant 0 : i32
    %c0_i32_1 = arith.constant 0 : i32
    return %arg0, %c0_i32, %c0_i32_0 : i32, i32, i32
  }
}

</mosaic_0001>

<bundles_post_ra>
// kernel: separated_forward.1
= control target key start
LH: loop header
LB: loop body
LE: loop exit
PB: predicated region body
PF: predicated region fallthrough
CT: control target
= control target key end

     0   :  { %s3065_s17 = smov 0   ;;  %s3720_s0 = inlined_call_operand.vmem [shape: bf16[2,8,128], index: 0, kind: input, shape index: {}]   ;;  %s3721_s1 = inlined_call_operand.vmem [shape: bf16[384,128], index: 1, kind: input, shape index: {}]   ;;  %s3722_s2 = inlined_call_operand.vmem [shape: f32[1,128], index: 2, kind: input, shape index: {}]   ;;  %s3723_s3 = inlined_call_operand.vmem [shape: bf16[128,128], index: 3, kind: input, shape index: {}]   ;;  %s3724_s4 = inlined_call_operand.vmem [shape: f32[1,128], index: 4, kind: input, shape index: {}]   ;;  %s3725_s5 = inlined_call_operand.vmem [shape: bf16[384,256], index: 5, kind: input, shape index: {}]   ;;  %s3726_s6 = inlined_call_operand.vmem [shape: f32[1,256], index: 6, kind: input, shape index: {}]   ;;  %s3727_s7 = inlined_call_operand.vmem [shape: bf16[256,512], index: 7, kind: input, shape index: {}]   ;;  %s3728_s8 = inlined_call_operand.vmem [shape: f32[1,512], index: 8, kind: input, shape index: {}]   ;;  %s3729_s9 = inlined_call_operand.vmem [shape: bf16[512,64], index: 9, kind: input, shape index: {}]   ;;  %s3730_s10 = inlined_call_operand.vmem [shape: f32[1,64], index: 10, kind: input, shape index: {}]   ;;  %s3731_s11 = inlined_call_operand.vmem [shape: f32[2,8,64], index: 11, kind: output, shape index: {}]  }
   0x1 LB: > { %s2372_s18 = sadd.s32 4294967295, %s2999_s17   ;;  %p2376_p0 = scmp.ge.s32.totalorder %s2999_s17, 1  ;;  %s2999_s17 = sphi %s3065_s17, %s21_s17  }
   0x2   : > { %p336_p1 = scmp.lt.s32.totalorder %s2999_s17, 3 }
   0x4   : > { %p337_p2 = pnand %p2376_p0, %p336_p1 }
   0x5   : > { %p374_p3 = scmp.lt.s32.totalorder (!%p337_p2), %s2372_s18, 1  ;;  %v383_v0 = vlaneseq (!%p337_p2)  ;;  %v3001_v1 = vmov (!%p337_p2), 0.0   ;;  %vm3002_vm0 = vmmov (!%p337_p2), 0   ;;  %vm402_vm1 = vcmask (!%p337_p2), 1043456   ;;  %v2741_v6 = vld [vmem:[%s3721_s1 + $0x40] sm:$0xff] (!%p337_p2)   ;;  %v2744_v15 = vld [vmem:[%s3721_s1 + $0x48] sm:$0xff] (!%p337_p2)  }
   0x6   : > { %340 = sbr.rel (%p337_p2) target bundleno = 1734 (0x6c6), region = 64  ;;  %2659 = vmatprep.subr.bf16.mxu0 (!%p337_p2), %v3001_v1  ;;  %2665 = vmatprep.subr.bf16.mxu1 (!%p337_p2), %v3001_v1  ;;  %vm398_vm3 = vcmask (!%p337_p2), 64512   ;;  %v2742_v8 = vld [vmem:[%s3721_s1] sm:$0xff] (!%p337_p2)   ;;  %v2745_v16 = vld [vmem:[%s3721_s1 + $0x8] sm:$0xff] (!%p337_p2)   ;;  %v2747_v18 = vld [vmem:[%s3721_s1 + $0x50] sm:$0xff] (!%p337_p2)   ;;  %vm2317_vm10 = vcmask (!%p337_p2), 523264  }
   0x7   : > { %2661 = vmatprep.mubr.msk.bf16.mxu0 (!%p337_p2), %vm3002_vm0, %v3001_v1  ;;  %v3079_v2 = vshrl.u32 (!%p337_p2), %v383_v0, 7  ;;  %v386_v3 = vand.u32 (!%p337_p2), 127, %v383_v0  ;;  %2667 = vmatprep.mubr.msk.bf16.mxu1 (!%p337_p2), %vm3002_vm0, %v3001_v1  ;;  %v2743_v12 = vld [vmem:[%s3721_s1 + $0x80] sm:$0xff] (!%p337_p2)   ;;  %v2746_v17 = vld [vmem:[%s3721_s1 + $0x88] sm:$0xff] (!%p337_p2)   ;;  %v2748_v19 = vld [vmem:[%s3721_s1 + $0x10] sm:$0xff] (!%p337_p2)  }
   0x8   : > { %v2749_v20 = vld [vmem:[%s3721_s1 + $0x90] sm:$0xff] (!%p337_p2)   ;;  %v2750_v21 = vld [vmem:[%s3721_s1 + $0x58] sm:$0xff] (!%p337_p2)   ;;  %v2753_v24 = vld [vmem:[%s3721_s1 + $0x60] sm:$0xff] (!%p337_p2)  }
   0x9   : > { %v2379_v4 = vadd.s32 (!%p337_p2), 4294967295, %v3079_v2  ;;  %v392_v5 = vadd.s32 (!%p337_p2), 1, %v3079_v2  ;;  %v2751_v22 = vld [vmem:[%s3721_s1 + $0x18] sm:$0xff] (!%p337_p2)   ;;  %v2754_v25 = vld [vmem:[%s3721_s1 + $0x20] sm:$0xff] (!%p337_p2)   ;;  %v2756_v27 = vld [vmem:[%s3721_s1 + $0x68] sm:$0xff] (!%p337_p2)  }
   0xa   : > { %v2752_v23 = vld [vmem:[%s3721_s1 + $0x98] sm:$0xff] (!%p337_p2)   ;;  %v2755_v26 = vld [vmem:[%s3721_s1 + $0xa0] sm:$0xff] (!%p337_p2)   ;;  %v2757_v28 = vld [vmem:[%s3721_s1 + $0x28] sm:$0xff] (!%p337_p2)  }
   0xb   : > { %vm388_vm2 = vcmp.eq.s32.totalorder (!%p337_p2), %v386_v3, %v2379_v4  ;;  %vm393_vm4 = vcmp.eq.s32.totalorder (!%p337_p2), %v386_v3, %v392_v5  ;;  %v2758_v29 = vld [vmem:[%s3721_s1 + $0xa8] sm:$0xff] (!%p337_p2)   ;;  %v2759_v30 = vld [vmem:[%s3721_s1 + $0x70] sm:$0xff] (!%p337_p2)   ;;  %v2762_v33 = vld [vmem:[%s3721_s1 + $0x78] sm:$0xff] (!%p337_p2)  }
   0xc   : > { %v2380_v10 = vsel (!%p337_p2), %vm388_vm2, 1.0, %v3001_v1  ;;  %v2381_v11 = vsel (!%p337_p2), %vm393_vm4, 1.0, %v3001_v1  ;;  %v2760_v31 = vld [vmem:[%s3721_s1 + $0x30] sm:$0xff] (!%p337_p2)   ;;  %v2763_v34 = vld [vmem:[%s3721_s1 + $0x38] sm:$0xff] (!%p337_p2)   ;;  %v2765_v38 = vld [vmem:[%s3723_s3] sm:$0xff] (!%p337_p2)  }
   0xd   : > { %s3733_s18 = smov (!%p374_p3, %s2372_s18), 1  ;;  %v3101_v13 = vpack.c.bf16 %v2380_v10, %v2380_v10  ;;  %v3103_v14 = vpack.c.bf16 %v2381_v11, %v2381_v11  ;;  %v2761_v32 = vld [vmem:[%s3721_s1 + $0xb0] sm:$0xff]   ;;  %v2764_v35 = vld [vmem:[%s3721_s1 + $0xb8] sm:$0xff]   ;;  %v2766_v47 = vld [vmem:[%s3723_s3 + $0x8] sm:$0xff]  }
   0xe   : > { %s2377_s19 = sshll.u32 %s3733_s18, 2  ;;  %v2767_v48 = vld [vmem:[%s3723_s3 + $0x10] sm:$0xff]   ;;  %v2768_v49 = vld [vmem:[%s3723_s3 + $0x18] sm:$0xff]   ;;  %v2769_v50 = vld [vmem:[%s3723_s3 + $0x20] sm:$0xff]   ;;  %s2378_s28 = sshll.u32 %s3733_s18, 3 }
   0xf   : > { %s377_s22 = scalar_lea.vmem %s3720_s0, %s2377_s19  ;;  %v2770_v51 = vld [vmem:[%s3723_s3 + $0x28] sm:$0xff]   ;;  %v2771_v52 = vld [vmem:[%s3723_s3 + $0x30] sm:$0xff]   ;;  %v2772_v53 = vld [vmem:[%s3723_s3 + $0x38] sm:$0xff]   ;;  %s381_s12 = scalar_lea.vmem %s3731_s11, %s2378_s28 }
  0x10   : > { %v397_v7 = vld [vmem:[%s377_s22] sm:$0xf] }
  0x11   : > { %v404_v9 = vsel %vm402_vm1, %v397_v7, 0  ;;  %v2384_v57 = vld [vmem:[%s3722_s2] ss:$0 sm:$0xff] }
  0x12   : > { %2660 = vmatpush3.bf16.msra.mxu0 %v404_v9  ;;  %2666 = vmatpush3.bf16.msra.mxu1 %v404_v9  ;;  %v2409_v5 = vld [vmem:[%s3724_s4] ss:$0 sm:$0xff] }
  0x13   : > { %2571 = vmatprep.subr.bf16.mxu0 %v2741_v6  ;;  %2671 = vmatprep.subr.bf16.mxu1 %v3001_v1 }
  0x15   : > { %2662 = vmatmul.mubr.msk.bf16.vlgmr.msra.gmra.mrb[0].mxu0 %vm398_vm3, %v3101_v13  ;;  %2668 = vmatmul.mubr.msk.bf16.vlgmr.msra.gmra.mrb[0].mxu1 %vm398_vm3, %v3103_v14 }
  0x16   : > { %2572 = vmatpush3.bf16.msra.mxu0 %v2742_v8  ;;  %2672 = vmatpush3.bf16.msra.mxu1 %v2743_v12 }
  0x17   : > { %2573 = vmatprep.subr.bf16.mxu0 %v2744_v15  ;;  %2673 = vmatprep.subr.bf16.mxu1 %v3001_v1 }
  0x18   : > { %722 = vmatprep.mubr.bf16.mxu0 %v397_v7  ;;  %2687 = vmatprep.mubr.msk.bf16.mxu1 %vm3002_vm0, %v3001_v1 }
  0x1a   : > { %2574 = vmatpush3.bf16.msra.mxu0 %v2745_v16  ;;  %2674 = vmatpush3.bf16.msra.mxu1 %v2746_v17 }
  0x1b   : > { %2575 = vmatprep.subr.bf16.mxu0 %v2747_v18  ;;  %2675 = vmatprep.subr.bf16.mxu1 %v3001_v1 }
  0x1e   : > { %2576 = vmatpush3.bf16.msra.mxu0 %v2748_v19  ;;  %2676 = vmatpush3.bf16.msra.mxu1 %v2749_v20 }
  0x1f   : > { %2577 = vmatprep.subr.bf16.mxu0 %v2750_v21  ;;  %2677 = vmatprep.subr.bf16.mxu1 %v3001_v1 }
  0x22   : > { %2578 = vmatpush3.bf16.msra.mxu0 %v2751_v22  ;;  %2678 = vmatpush3.bf16.msra.mxu1 %v2752_v23 }
  0x23   : > { %2579 = vmatprep.subr.bf16.mxu0 %v2753_v24  ;;  %2679 = vmatprep.subr.bf16.mxu1 %v3001_v1 }
  0x26   : > { %2580 = vmatpush3.bf16.msra.mxu0 %v2754_v25  ;;  %2680 = vmatpush3.bf16.msra.mxu1 %v2755_v26 }
  0x27   : > { %2581 = vmatprep.subr.bf16.mxu0 %v2756_v27  ;;  %2681 = vmatprep.subr.bf16.mxu1 %v3001_v1 }
  0x2a   : > { %2582 = vmatpush3.bf16.msra.mxu0 %v2757_v28  ;;  %2682 = vmatpush3.bf16.msra.mxu1 %v2758_v29 }
  0x2b   : > { %2583 = vmatprep.subr.bf16.mxu0 %v2759_v30  ;;  %2683 = vmatprep.subr.bf16.mxu1 %v3001_v1 }
  0x2e   : > { %2584 = vmatpush3.bf16.msra.mxu0 %v2760_v31  ;;  %2684 = vmatpush3.bf16.msra.mxu1 %v2761_v32  ;;  %v3003_v32 = vmov -1.0  }
  0x2f   : > { %2585 = vmatprep.subr.bf16.mxu0 %v2762_v33  ;;  %2685 = vmatprep.subr.bf16.mxu1 %v3001_v1 }
  0x32   : > { %2586 = vmatpush3.bf16.msra.mxu0 %v2763_v34  ;;  %2686 = vmatpush3.bf16.msra.mxu1 %v2764_v35 }
  0x33   : > { %2691 = vmatprep.subr.bf16.mxu0 %v3001_v1  ;;  %2717 = vmatprep.subr.bf16.mxu1 %v3001_v1 }
  0xe8   : > { %v440_v36 = vpop.f32.mrb[0].mxu0  ;;  %v483_v37 = vpop.f32.mrb[0].mxu1 }
  0xe9   : > { %v489_v39 = vpack.c.bf16 %v440_v36, %v440_v36  ;;  %v2663_v40 = vpop.f32.mrb[1].mxu0  ;;  %v490_v41 = vpack.c.bf16 %v483_v37, %v483_v37  ;;  %v2669_v42 = vpop.f32.mrb[1].mxu1 }
  0xea   : > { %v443_v43 = vpop.f32.mrb[2].mxu0  ;;  %v486_v44 = vpop.f32.mrb[2].mxu1  ;;  %v2778_v42 = vld [vmem:[%s3725_s5 + $0x14] ss:$8 sps:$4 sm:$0xff]  }
  0xeb   : > { %v2664_v45 = vpop.f32.mrb[3].mxu0  ;;  %723 = vmatmul.mubr.bf16.vlgmr.msra.gmra.mrb[4].mxu0 %v489_v39  ;;  %v2670_v46 = vpop.f32.mrb[3].mxu1  ;;  %2688 = vmatmul.mubr.bf16.vlgmr.msra.gmra.mrb[4].mxu1 %v490_v41  ;;  %v2775_v39 = vld [vmem:[%s3725_s5 + $0x4] ss:$8 sps:$4 sm:$0xff]   ;;  %v2773_v41 = vld [vmem:[%s3725_s5] ss:$8 sps:$4 sm:$0xff]  }
  0xec   : > { %2692 = vmatpush3.bf16.msra.mxu0 %v2765_v38  ;;  %2707 = vmatprep.mubr.msk.bf16.mxu0 %vm3002_vm0, %v3001_v1  ;;  %v2776_v43 = vld [vmem:[%s3725_s5 + $0x10] ss:$8 sps:$4 sm:$0xff]   ;;  %v2781_v44 = vld [vmem:[%s3725_s5 + $0x24] ss:$8 sps:$4 sm:$0xff]   ;;  %v2779_v45 = vld [vmem:[%s3725_s5 + $0x20] ss:$8 sps:$4 sm:$0xff]  }
  0xed   : > { %2693 = vmatprep.subr.bf16.mxu0 %v3001_v1  ;;  %2719 = vmatprep.mubr.msk.bf16.mxu1 %vm3002_vm0, %v3001_v1  ;;  %v2787_v46 = vld [vmem:[%s3725_s5 + $0x44] ss:$8 sps:$4 sm:$0xff]  }
  0xf0   : > { %2694 = vmatpush3.bf16.msra.mxu0 %v2766_v47  ;;  %v2785_v47 = vld [vmem:[%s3725_s5 + $0x40] ss:$8 sps:$4 sm:$0xff]  }
  0xf1   : > { %2695 = vmatprep.subr.bf16.mxu0 %v3001_v1 }
  0xf4   : > { %2696 = vmatpush3.bf16.msra.mxu0 %v2767_v48  ;;  %v2790_v48 = vld [vmem:[%s3725_s5 + $0x54] ss:$8 sps:$4 sm:$0xff]  }
  0xf5   : > { %2697 = vmatprep.subr.bf16.mxu0 %v3001_v1 }
  0xf8   : > { %2698 = vmatpush3.bf16.msra.mxu0 %v2768_v49  ;;  %v2788_v49 = vld [vmem:[%s3725_s5 + $0x50] ss:$8 sps:$4 sm:$0xff]  }
  0xf9   : > { %2699 = vmatprep.subr.bf16.mxu0 %v3001_v1 }
  0xfc   : > { %2700 = vmatpush3.bf16.msra.mxu0 %v2769_v50  ;;  %v2793_v50 = vld [vmem:[%s3725_s5 + $0x64] ss:$8 sps:$4 sm:$0xff]  }
  0xfd   : > { %2701 = vmatprep.subr.bf16.mxu0 %v3001_v1 }
 0x100   : > { %2702 = vmatpush3.bf16.msra.mxu0 %v2770_v51  ;;  %v2791_v51 = vld [vmem:[%s3725_s5 + $0x60] ss:$8 sps:$4 sm:$0xff]  }
 0x101   : > { %2703 = vmatprep.subr.bf16.mxu0 %v3001_v1 }
 0x104   : > { %2704 = vmatpush3.bf16.msra.mxu0 %v2771_v52  ;;  %v2796_v52 = vld [vmem:[%s3725_s5 + $0x74] ss:$8 sps:$4 sm:$0xff]  }
 0x105   : > { %2705 = vmatprep.subr.bf16.mxu0 %v3001_v1 }
 0x108   : > { %2706 = vmatpush3.bf16.msra.mxu0 %v2772_v53  ;;  %v2794_v53 = vld [vmem:[%s3725_s5 + $0x70] ss:$8 sps:$4 sm:$0xff]  }
 0x109   : > { %2711 = vmatprep.subr.bf16.mxu0 %v3001_v1 }
 0x1be   : > { %v2587_v54 = vpop.f32.mrb[4].mxu0  ;;  %v764_v55 = vpop.f32.mrb[4].mxu1 }
 0x1bf   : > { %v2588_v56 = vpop.f32.mrb[5].mxu0  ;;  %v2689_v58 = vpop.f32.mrb[5].mxu1 }
 0x1c0   : > { %v2589_v59 = vadd.f32 %v2588_v56, %v2587_v54  ;;  %v2590_v60 = vpop.f32.mrb[6].mxu0  ;;  %v767_v61 = vpop.f32.mrb[6].mxu1  ;;  %v2799_v54 = vld [vmem:[%s3725_s5 + $0x84] ss:$8 sps:$4 sm:$0xff]   ;;  %v2802_v56 = vld [vmem:[%s3725_s5 + $0x94] ss:$8 sps:$4 sm:$0xff]  }
 0x1c1   : > { %v2591_v62 = vpop.f32.mrb[7].mxu0  ;;  %v2690_v63 = vpop.f32.mrb[7].mxu1  ;;  %v2805_v58 = vld [vmem:[%s3725_s5 + $0xa4] ss:$8 sps:$4 sm:$0xff]   ;;  %v2808_v60 = vld [vmem:[%s3725_s5 + $0xb4] ss:$8 sps:$4 sm:$0xff]  }
 0x1c2   : > { %v725_v0 = vadd.f32 %v2589_v59, %v2384_v57  ;;  %v2800_v57 = vld [vmem:[%s3725_s5 + $0x90] ss:$8 sps:$4 sm:$0xff]   ;;  %v2803_v59 = vld [vmem:[%s3725_s5 + $0xa0] ss:$8 sps:$4 sm:$0xff]   ;;  %v2811_v62 = vld [vmem:[%s3725_s5 + $0xc4] ss:$8 sps:$4 sm:$0xff]  }
 0x1c3   : > { %v2806_v61 = vld [vmem:[%s3725_s5 + $0xb0] ss:$8 sps:$4 sm:$0xff]   ;;  %v2809_v63 = vld [vmem:[%s3725_s5 + $0xc0] ss:$8 sps:$4 sm:$0xff]  }
 0x1c4   : > { %v765_v3 = vadd.f32 %v764_v55, %v725_v0  ;;  %v2797_v55 = vld [vmem:[%s3725_s5 + $0x80] ss:$8 sps:$4 sm:$0xff]   ;;  %v2814_v0 = vld [vmem:[%s3725_s5 + $0xd4] ss:$8 sps:$4 sm:$0xff]  }
 0x1c6   : > { %v770_v4 = vpack.c.bf16 %v765_v3, %v765_v3  ;;  %v2812_v3 = vld [vmem:[%s3725_s5 + $0xd0] ss:$8 sps:$4 sm:$0xff]  }
 0x1c8   : > { %2708 = vmatmul.mubr.bf16.vlgmr.msra.gmra.mrb[8].mxu0 %v770_v4  ;;  %v2817_v4 = vld [vmem:[%s3725_s5 + $0xe4] ss:$8 sps:$4 sm:$0xff]  }
 0x1c9   : > { %2713 = vmatprep.mubr.msk.bf16.mxu0 %vm3002_vm0, %v3001_v1 }
 0x29b   : > { %v876_v6 = vpop.f32.mrb[8].mxu0 }
 0x29c   : > { %v877_v7 = vadd.f32 %v2409_v5, %v876_v6  ;;  %v2709_v8 = vpop.f32.mrb[9].mxu0  ;;  %v2815_v5 = vld [vmem:[%s3725_s5 + $0xe0] ss:$8 sps:$4 sm:$0xff]   ;;  %v2820_v6 = vld [vmem:[%s3725_s5 + $0xf4] ss:$8 sps:$4 sm:$0xff]  }
 0x29d   : > { %v879_v9 = vpop.f32.mrb[10].mxu0  ;;  %v2823_v8 = vld [vmem:[%s3725_s5 + $0x104] ss:$8 sps:$4 sm:$0xff]  }
 0x29e   : > { %v883_v10 = vmul.f32 0.70710677, %v877_v7  ;;  %v2710_v11 = vpop.f32.mrb[11].mxu0  ;;  %v882_v35 = vmul.f32 0.5, %v877_v7  ;;  %v2818_v7 = vld [vmem:[%s3725_s5 + $0xf0] ss:$8 sps:$4 sm:$0xff]  }
 0x29f   : > { %v2845_v9 = vld [vmem:[%s3727_s7] ss:$16 sps:$4 sm:$0xff]   ;;  %v2850_v11 = vld [vmem:[%s3727_s7 + $0x24] ss:$16 sps:$4 sm:$0xff]  }
 0x2a0   : > { %v886_v12 = vand.u32 2147483647, %v883_v10  ;;  %vm884_vm5 = vcmp.ge.f32.partialorder %v883_v10, 0.0  ;;  %v2847_v10 = vld [vmem:[%s3727_s7 + $0x4] ss:$16 sps:$4 sm:$0xff]  }
 0x2a1   : > { %v885_v33 = vsel %vm884_vm5, 1.0, %v3003_v32 }
 0x2a2   : > { %v887_v15 = vmul.f32 0.3275911, %v886_v12  ;;  %v899_v17 = vsub.f32 0.0, %v886_v12 }
 0x2a4   : > { %v888_v16 = vadd.f32 1.0, %v887_v15  ;;  %v900_v19 = vmul.f32 %v899_v17, %v886_v12  ;;  %v2848_v12 = vld [vmem:[%s3727_s7 + $0x20] ss:$16 sps:$4 sm:$0xff]   ;;  %v2853_v15 = vld [vmem:[%s3727_s7 + $0x44] ss:$16 sps:$4 sm:$0xff]  }
 0x2a5   : > { %v2856_v17 = vld [vmem:[%s3727_s7 + $0x64] ss:$16 sps:$4 sm:$0xff]  }
 0x2a6   : > { %2973 = vrcp.f32 %v888_v16  ;;  %v901_v1 = vmul.f32 1.442695, %v900_v19  ;;  %v2851_v16 = vld [vmem:[%s3727_s7 + $0x40] ss:$16 sps:$4 sm:$0xff]   ;;  %v2859_v19 = vld [vmem:[%s3727_s7 + $0x84] ss:$16 sps:$4 sm:$0xff]  }
 0x2a8   : > { %2975 = vpow2.f32 %v901_v1  ;;  %v2860_v1 = vld [vmem:[%s3727_s7 + $0xa0] ss:$16 sps:$4 sm:$0xff]  }
 0x2b0   : > { %v2974_v18 = vpop.eup %2973 }
 0x2b1   : > { %v890_v20 = vmul.f32 1.0614054, %v2974_v18 }
 0x2b2   : > { %v2976_v29 = vpop.eup %2975 }
 0x2b3   : > { %v891_v21 = vadd.f32 -1.4531521, %v890_v20  ;;  %v2857_v20 = vld [vmem:[%s3727_s7 + $0x80] ss:$16 sps:$4 sm:$0xff]  }
 0x2b5   : > { %v892_v22 = vmul.f32 %v2974_v18, %v891_v21  ;;  %v2862_v21 = vld [vmem:[%s3727_s7 + $0xa4] ss:$16 sps:$4 sm:$0xff]  }
 0x2b7   : > { %v893_v23 = vadd.f32 1.4214138, %v892_v22  ;;  %v2865_v22 = vld [vmem:[%s3727_s7 + $0xc4] ss:$16 sps:$4 sm:$0xff]  }
 0x2b9   : > { %v894_v24 = vmul.f32 %v2974_v18, %v893_v23  ;;  %v2863_v23 = vld [vmem:[%s3727_s7 + $0xc0] ss:$16 sps:$4 sm:$0xff]  }
 0x2bb   : > { %v895_v25 = vadd.f32 -0.28449672, %v894_v24  ;;  %v2868_v24 = vld [vmem:[%s3727_s7 + $0xe4] ss:$16 sps:$4 sm:$0xff]  }
 0x2bd   : > { %v896_v26 = vmul.f32 %v2974_v18, %v895_v25  ;;  %v2866_v25 = vld [vmem:[%s3727_s7 + $0xe0] ss:$16 sps:$4 sm:$0xff]  }
 0x2bf   : > { %v897_v27 = vadd.f32 0.2548296, %v896_v26  ;;  %v2871_v26 = vld [vmem:[%s3727_s7 + $0x104] ss:$16 sps:$4 sm:$0xff]  }
 0x2c1   : > { %v898_v28 = vmul.f32 %v2974_v18, %v897_v27  ;;  %v2854_v18 = vld [vmem:[%s3727_s7 + $0x60] ss:$16 sps:$4 sm:$0xff]  }
 0x2c2   : > { %v2869_v27 = vld [vmem:[%s3727_s7 + $0x100] ss:$16 sps:$4 sm:$0xff]  }
 0x2c3   : > { %v903_v30 = vmul.f32 %v2976_v29, %v898_v28  ;;  %v2874_v28 = vld [vmem:[%s3727_s7 + $0x124] ss:$16 sps:$4 sm:$0xff]   ;;  %v2872_v29 = vld [vmem:[%s3727_s7 + $0x120] ss:$16 sps:$4 sm:$0xff]  }
 0x2c5   : > { %v904_v31 = vsub.f32 1.0, %v903_v30  ;;  %v2877_v30 = vld [vmem:[%s3727_s7 + $0x144] ss:$16 sps:$4 sm:$0xff]  }
 0x2c7   : > { %v905_v34 = vmul.f32 %v904_v31, %v885_v33  ;;  %v2875_v31 = vld [vmem:[%s3727_s7 + $0x140] ss:$16 sps:$4 sm:$0xff]   ;;  %v2880_v33 = vld [vmem:[%s3727_s7 + $0x164] ss:$16 sps:$4 sm:$0xff]  }
 0x2c9   : > { %v906_v36 = vadd.f32 1.0, %v905_v34  ;;  %v2878_v34 = vld [vmem:[%s3727_s7 + $0x160] ss:$16 sps:$4 sm:$0xff]  }
 0x2cb   : > { %v907_v37 = vmul.f32 %v906_v36, %v882_v35  ;;  %v2883_v35 = vld [vmem:[%s3727_s7 + $0x184] ss:$16 sps:$4 sm:$0xff]   ;;  %v2881_v36 = vld [vmem:[%s3727_s7 + $0x180] ss:$16 sps:$4 sm:$0xff]  }
 0x2cd   : > { %v908_v38 = vpack.c.bf16 %v907_v37, %v907_v37  ;;  %v2886_v37 = vld [vmem:[%s3727_s7 + $0x1a4] ss:$16 sps:$4 sm:$0xff]  }
 0x2cf   : > { %v910_v40 = vsel %vm402_vm1, %v908_v38, 0 }
 0x2d0   : > { %2712 = vmatpush3.bf16.msra.mxu0 %v910_v40  ;;  %2718 = vmatpush3.bf16.msra.mxu1 %v910_v40  ;;  %v2887_v40 = vld [vmem:[%s3727_s7 + $0x1c0] ss:$16 sps:$4 sm:$0xff]  }
 0x2d1   : > { %1294 = vmatprep.subr.bf16.mxu1 %v2775_v39  ;;  %1784 = vmatprep.subr.bf16.mxu0 %v2847_v10  ;;  %v2889_v39 = vld [vmem:[%s3727_s7 + $0x1c4] ss:$16 sps:$4 sm:$0xff]  }
 0x2d3   : > { %2714 = vmatmul.mubr.msk.bf16.vlgmr.msra.gmra.mrb[12].mxu0 %vm398_vm3, %v3101_v13  ;;  %2720 = vmatmul.mubr.msk.bf16.vlgmr.msra.gmra.mrb[8].mxu1 %vm398_vm3, %v3103_v14  ;;  %v2784_v13 = vld [vmem:[%s3725_s5 + $0x34] ss:$8 sps:$4 sm:$0xff]   ;;  %v2782_v14 = vld [vmem:[%s3725_s5 + $0x30] ss:$8 sps:$4 sm:$0xff]  }
 0x2d4   : > { %1326 = vmatprep.mubr.bf16.mxu1 %v908_v38  ;;  %1295 = vmatpush1.bf16.msra.mxu1 %v2773_v41  ;;  %v2884_v38 = vld [vmem:[%s3727_s7 + $0x1a0] ss:$16 sps:$4 sm:$0xff]  }
 0x2d5   : > { %1296 = vmatprep.subr.bf16.mxu1 %v2778_v42  ;;  %1785 = vmatpush1.bf16.msra.mxu0 %v2845_v9  ;;  %v2821_v42 = vld [vmem:[%s3725_s5 + $0x100] ss:$8 sps:$4 sm:$0xff]  }
 0x2d6   : > { %1786 = vmatprep.subr.bf16.mxu0 %v2850_v11 }
 0x2d8   : > { %1297 = vmatpush1.bf16.msra.mxu1 %v2776_v43 }
 0x2d9   : > { %1298 = vmatprep.subr.bf16.mxu1 %v2781_v44  ;;  %1787 = vmatpush1.bf16.msra.mxu0 %v2848_v12 }
 0x2da   : > { %1788 = vmatprep.subr.bf16.mxu0 %v2853_v15 }
 0x2dc   : > { %1299 = vmatpush1.bf16.msra.mxu1 %v2779_v45 }
 0x2dd   : > { %1300 = vmatprep.subr.bf16.mxu1 %v2784_v13  ;;  %1789 = vmatpush1.bf16.msra.mxu0 %v2851_v16  ;;  %v2826_v13 = vld [vmem:[%s3725_s5 + $0x114] ss:$8 sps:$4 sm:$0xff]  }
 0x2de   : > { %1790 = vmatprep.subr.bf16.mxu0 %v2856_v17 }
 0x2e0   : > { %1301 = vmatpush1.bf16.msra.mxu1 %v2782_v14 }
 0x2e1   : > { %1302 = vmatprep.subr.bf16.mxu1 %v2787_v46  ;;  %1791 = vmatpush1.bf16.msra.mxu0 %v2854_v18 }
 0x2e2   : > { %1792 = vmatprep.subr.bf16.mxu0 %v2859_v19 }
 0x2e4   : > { %1303 = vmatpush1.bf16.msra.mxu1 %v2785_v47 }
 0x2e5   : > { %1304 = vmatprep.subr.bf16.mxu1 %v2790_v48  ;;  %1793 = vmatpush1.bf16.msra.mxu0 %v2857_v20  ;;  %v2893_v20 = vld [vmem:[%s3727_s7 + $0x8] ss:$16 sps:$4 sm:$0xff]  }
 0x2e6   : > { %1794 = vmatprep.subr.bf16.mxu0 %v2862_v21 }
 0x2e8   : > { %1305 = vmatpush1.bf16.msra.mxu1 %v2788_v49 }
 0x2e9   : > { %1306 = vmatprep.subr.bf16.mxu1 %v2793_v50  ;;  %1795 = vmatpush1.bf16.msra.mxu0 %v2860_v1  ;;  %v2824_v50 = vld [vmem:[%s3725_s5 + $0x110] ss:$8 sps:$4 sm:$0xff]   ;;  %v2898_v1 = vld [vmem:[%s3727_s7 + $0x2c] ss:$16 sps:$4 sm:$0xff]  }
 0x2ea   : > { %1796 = vmatprep.subr.bf16.mxu0 %v2865_v22  ;;  %v2896_v22 = vld [vmem:[%s3727_s7 + $0x28] ss:$16 sps:$4 sm:$0xff]  }
 0x2ec   : > { %1307 = vmatpush1.bf16.msra.mxu1 %v2791_v51  ;;  %v3004_v51 = vmov 0  }
 0x2ed   : > { %1308 = vmatprep.subr.bf16.mxu1 %v2796_v52  ;;  %1797 = vmatpush1.bf16.msra.mxu0 %v2863_v23  ;;  %v2829_v52 = vld [vmem:[%s3725_s5 + $0x124] ss:$8 sps:$4 sm:$0xff]  }
 0x2ee   : > { %1798 = vmatprep.subr.bf16.mxu0 %v2868_v24  ;;  %v2901_v23 = vld [vmem:[%s3727_s7 + $0x4c] ss:$16 sps:$4 sm:$0xff]   ;;  %v2899_v24 = vld [vmem:[%s3727_s7 + $0x48] ss:$16 sps:$4 sm:$0xff]  }
 0x2f0   : > { %1309 = vmatpush1.bf16.msra.mxu1 %v2794_v53  ;;  %v2827_v53 = vld [vmem:[%s3725_s5 + $0x120] ss:$8 sps:$4 sm:$0xff]  }
 0x2f1   : > { %1310 = vmatprep.subr.bf16.mxu1 %v2799_v54  ;;  %1799 = vmatpush1.bf16.msra.mxu0 %v2866_v25  ;;  %v2832_v54 = vld [vmem:[%s3725_s5 + $0x134] ss:$8 sps:$4 sm:$0xff]  }
 0x2f2   : > { %1800 = vmatprep.subr.bf16.mxu0 %v2871_v26  ;;  %v2904_v25 = vld [vmem:[%s3727_s7 + $0x6c] ss:$16 sps:$4 sm:$0xff]   ;;  %v2902_v26 = vld [vmem:[%s3727_s7 + $0x68] ss:$16 sps:$4 sm:$0xff]  }
 0x2f4   : > { %1311 = vmatpush1.bf16.msra.mxu1 %v2797_v55  ;;  %v2830_v55 = vld [vmem:[%s3725_s5 + $0x130] ss:$8 sps:$4 sm:$0xff]  }
 0x2f5   : > { %1312 = vmatprep.subr.bf16.mxu1 %v2802_v56  ;;  %1801 = vmatpush1.bf16.msra.mxu0 %v2869_v27  ;;  %v2835_v56 = vld [vmem:[%s3725_s5 + $0x144] ss:$8 sps:$4 sm:$0xff]  }
 0x2f6   : > { %1802 = vmatprep.subr.bf16.mxu0 %v2874_v28  ;;  %v2907_v27 = vld [vmem:[%s3727_s7 + $0x8c] ss:$16 sps:$4 sm:$0xff]   ;;  %v2905_v28 = vld [vmem:[%s3727_s7 + $0x88] ss:$16 sps:$4 sm:$0xff]  }
 0x2f8   : > { %1313 = vmatpush1.bf16.msra.mxu1 %v2800_v57  ;;  %v2833_v57 = vld [vmem:[%s3725_s5 + $0x140] ss:$8 sps:$4 sm:$0xff]  }
 0x2f9   : > { %1314 = vmatprep.subr.bf16.mxu1 %v2805_v58  ;;  %1803 = vmatpush1.bf16.msra.mxu0 %v2872_v29  ;;  %v2838_v58 = vld [vmem:[%s3725_s5 + $0x154] ss:$8 sps:$4 sm:$0xff]  }
 0x2fa   : > { %1804 = vmatprep.subr.bf16.mxu0 %v2877_v30  ;;  %v2910_v29 = vld [vmem:[%s3727_s7 + $0xac] ss:$16 sps:$4 sm:$0xff]   ;;  %v2908_v30 = vld [vmem:[%s3727_s7 + $0xa8] ss:$16 sps:$4 sm:$0xff]  }
 0x2fc   : > { %1315 = vmatpush1.bf16.msra.mxu1 %v2803_v59  ;;  %v2836_v59 = vld [vmem:[%s3725_s5 + $0x150] ss:$8 sps:$4 sm:$0xff]  }
 0x2fd   : > { %1316 = vmatprep.subr.bf16.mxu1 %v2808_v60  ;;  %1805 = vmatpush1.bf16.msra.mxu0 %v2875_v31  ;;  %v2841_v60 = vld [vmem:[%s3725_s5 + $0x164] ss:$8 sps:$4 sm:$0xff]  }
 0x2fe   : > { %1806 = vmatprep.subr.bf16.mxu0 %v2880_v33  ;;  %v2913_v31 = vld [vmem:[%s3727_s7 + $0xcc] ss:$16 sps:$4 sm:$0xff]   ;;  %v2911_v33 = vld [vmem:[%s3727_s7 + $0xc8] ss:$16 sps:$4 sm:$0xff]  }
 0x300   : > { %1317 = vmatpush1.bf16.msra.mxu1 %v2806_v61  ;;  %v2839_v61 = vld [vmem:[%s3725_s5 + $0x160] ss:$8 sps:$4 sm:$0xff]  }
 0x301   : > { %1318 = vmatprep.subr.bf16.mxu1 %v2811_v62  ;;  %1807 = vmatpush1.bf16.msra.mxu0 %v2878_v34  ;;  %v2844_v62 = vld [vmem:[%s3725_s5 + $0x174] ss:$8 sps:$4 sm:$0xff]  }
 0x302   : > { %1808 = vmatprep.subr.bf16.mxu0 %v2883_v35  ;;  %v2916_v34 = vld [vmem:[%s3727_s7 + $0xec] ss:$16 sps:$4 sm:$0xff]   ;;  %v2914_v35 = vld [vmem:[%s3727_s7 + $0xe8] ss:$16 sps:$4 sm:$0xff]  }
 0x304   : > { %1319 = vmatpush1.bf16.msra.mxu1 %v2809_v63  ;;  %v2842_v63 = vld [vmem:[%s3725_s5 + $0x170] ss:$8 sps:$4 sm:$0xff]  }
 0x305   : > { %1320 = vmatprep.subr.bf16.mxu1 %v2814_v0  ;;  %1809 = vmatpush1.bf16.msra.mxu0 %v2881_v36  ;;  %v2919_v36 = vld [vmem:[%s3727_s7 + $0x10c] ss:$16 sps:$4 sm:$0xff]  }
 0x306   : > { %1810 = vmatprep.subr.bf16.mxu0 %v2886_v37  ;;  %v2917_v37 = vld [vmem:[%s3727_s7 + $0x108] ss:$16 sps:$4 sm:$0xff]  }
 0x308   : > { %1321 = vmatpush1.bf16.msra.mxu1 %v2812_v3  ;;  %v2892_v3 = vld [vmem:[%s3727_s7 + $0x1e4] ss:$16 sps:$4 sm:$0xff]  }
 0x309   : > { %1322 = vmatprep.subr.bf16.mxu1 %v2817_v4  ;;  %1811 = vmatpush1.bf16.msra.mxu0 %v2884_v38  ;;  %v2890_v4 = vld [vmem:[%s3727_s7 + $0x1e0] ss:$16 sps:$4 sm:$0xff]   ;;  %v2922_v38 = vld [vmem:[%s3727_s7 + $0x12c] ss:$16 sps:$4 sm:$0xff]  }
 0x30a   : > { %1812 = vmatprep.subr.bf16.mxu0 %v2889_v39  ;;  %v2920_v39 = vld [vmem:[%s3727_s7 + $0x128] ss:$16 sps:$4 sm:$0xff]  }
 0x30c   : > { %1323 = vmatpush1.bf16.msra.mxu1 %v2815_v5  ;;  %v2895_v5 = vld [vmem:[%s3727_s7 + $0xc] ss:$16 sps:$4 sm:$0xff]  }
 0x30d   : > { %1324 = vmatprep.subr.bf16.mxu1 %v2820_v6  ;;  %1813 = vmatpush1.bf16.msra.mxu0 %v2887_v40  ;;  %v1046_v6 = vsub.s32 0, %v3079_v2  ;;  %v2925_v40 = vld [vmem:[%s3727_s7 + $0x14c] ss:$16 sps:$4 sm:$0xff]  }
 0x30e   : > { %1814 = vmatprep.subr.bf16.mxu0 %v2892_v3  ;;  %v2956_v3 = vld [vmem:[%s3729_s9 + $0x38] sm:$0xff]  }
 0x310   : > { %1325 = vmatpush1.bf16.msra.mxu1 %v2818_v7  ;;  %v1042_v7 = vld [vmem:[%s3726_s6] sm:$0x3] }
 0x311   : > { %1335 = vmatprep.subr.bf16.mxu1 %v2823_v8  ;;  %1815 = vmatpush1.bf16.msra.mxu0 %v2890_v4  ;;  %v1050_v8 = vsub.s32 1, %v3079_v2  ;;  %v1047_v9 = vrot.slane %v1042_v7, %v1046_v6  ;;  %v2957_v4 = vld [vmem:[%s3729_s9 + $0xc0] sm:$0xff]  }
 0x312   : > { %1825 = vmatprep.subr.bf16.mxu0 %v2895_v5  ;;  %v3637_v5 = vld [vmem:[%s3728_s8] sm:$0xf] }
 0x313   : > { %v1051_v10 = vrot.slane %v1042_v7, %v1050_v8  ;;  %v1447_v7 = vrot.slane %v3637_v5, %v1046_v6 }
 0x3a6   : > { %v946_v41 = vpop.f32.mrb[12].mxu0  ;;  %v986_v43 = vpop.f32.mrb[8].mxu1 }
 0x3a7   : > { %v992_v44 = vpack.c.bf16 %v946_v41, %v946_v41  ;;  %v2715_v45 = vpop.f32.mrb[13].mxu0  ;;  %v2721_v14 = vpop.f32.mrb[9].mxu1  ;;  %v993_v0 = vpack.c.bf16 %v986_v43, %v986_v43  ;;  %v2923_v41 = vld [vmem:[%s3727_s7 + $0x148] ss:$16 sps:$4 sm:$0xff]  }
 0x3a8   : > { %v949_v46 = vpop.f32.mrb[14].mxu0  ;;  %v989_v47 = vpop.f32.mrb[10].mxu1  ;;  %v2926_v43 = vld [vmem:[%s3727_s7 + $0x168] ss:$16 sps:$4 sm:$0xff]  }
 0x3a9   : > { %1327 = vmatmul.mubr.bf16.vlgmr.msra.gmra.mrb[12].mxu1 %v992_v44  ;;  %v2716_v48 = vpop.f32.mrb[15].mxu0  ;;  %v2722_v49 = vpop.f32.mrb[11].mxu1  ;;  %v2931_v44 = vld [vmem:[%s3727_s7 + $0x18c] ss:$16 sps:$4 sm:$0xff]   ;;  %v2929_v45 = vld [vmem:[%s3727_s7 + $0x188] ss:$16 sps:$4 sm:$0xff]  }
 0x3aa   : > { %1336 = vmatpush1.bf16.msra.mxu1 %v2821_v42  ;;  %1367 = vmatprep.mubr.bf16.mxu1 %v3004_v51  ;;  %v2928_v42 = vld [vmem:[%s3727_s7 + $0x16c] ss:$16 sps:$4 sm:$0xff]   ;;  %v2932_v14 = vld [vmem:[%s3727_s7 + $0x1a8] ss:$16 sps:$4 sm:$0xff]   ;;  %v2942_v51 = vld [vmem:[%s3729_s9] sm:$0xff]  }
 0x3ab   : > { %1337 = vmatprep.subr.bf16.mxu1 %v2826_v13  ;;  %v2934_v13 = vld [vmem:[%s3727_s7 + $0x1ac] ss:$16 sps:$4 sm:$0xff]   ;;  %v2935_v47 = vld [vmem:[%s3727_s7 + $0x1c8] ss:$16 sps:$4 sm:$0xff]  }
 0x3ac   : > { %v2937_v46 = vld [vmem:[%s3727_s7 + $0x1cc] ss:$16 sps:$4 sm:$0xff]   ;;  %v2938_v49 = vld [vmem:[%s3727_s7 + $0x1e8] ss:$16 sps:$4 sm:$0xff]  }
 0x3ad   : > { %v2940_v48 = vld [vmem:[%s3727_s7 + $0x1ec] ss:$16 sps:$4 sm:$0xff]  }
 0x3ae   : > { %1338 = vmatpush1.bf16.msra.mxu1 %v2824_v50  ;;  %v2941_v50 = vld [vmem:[%s3729_s9 + $0x40] sm:$0xff]  }
 0x3af   : > { %1339 = vmatprep.subr.bf16.mxu1 %v2829_v52  ;;  %v2943_v52 = vld [vmem:[%s3729_s9 + $0x48] sm:$0xff]  }
 0x3b2   : > { %1340 = vmatpush1.bf16.msra.mxu1 %v2827_v53  ;;  %v2944_v53 = vld [vmem:[%s3729_s9 + $0x8] sm:$0xff]  }
 0x3b3   : > { %1341 = vmatprep.subr.bf16.mxu1 %v2832_v54  ;;  %v2945_v54 = vld [vmem:[%s3729_s9 + $0x50] sm:$0xff]  }
 0x3b6   : > { %1342 = vmatpush1.bf16.msra.mxu1 %v2830_v55  ;;  %v2946_v55 = vld [vmem:[%s3729_s9 + $0x10] sm:$0xff]  }
 0x3b7   : > { %1343 = vmatprep.subr.bf16.mxu1 %v2835_v56  ;;  %v2947_v56 = vld [vmem:[%s3729_s9 + $0x58] sm:$0xff]  }
 0x3ba   : > { %1344 = vmatpush1.bf16.msra.mxu1 %v2833_v57  ;;  %v2948_v57 = vld [vmem:[%s3729_s9 + $0x18] sm:$0xff]  }
 0x3bb   : > { %1345 = vmatprep.subr.bf16.mxu1 %v2838_v58  ;;  %v2949_v58 = vld [vmem:[%s3729_s9 + $0x60] sm:$0xff]  }
 0x3be   : > { %1346 = vmatpush1.bf16.msra.mxu1 %v2836_v59  ;;  %v2950_v59 = vld [vmem:[%s3729_s9 + $0x20] sm:$0xff]  }
 0x3bf   : > { %1347 = vmatprep.subr.bf16.mxu1 %v2841_v60  ;;  %v2951_v60 = vld [vmem:[%s3729_s9 + $0x68] sm:$0xff]  }
 0x3c2   : > { %1348 = vmatpush1.bf16.msra.mxu1 %v2839_v61  ;;  %v2952_v61 = vld [vmem:[%s3729_s9 + $0x28] sm:$0xff]  }
 0x3c3   : > { %1349 = vmatprep.subr.bf16.mxu1 %v2844_v62  ;;  %v2953_v62 = vld [vmem:[%s3729_s9 + $0x70] sm:$0xff]  }
 0x3c6   : > { %1350 = vmatpush1.bf16.msra.mxu1 %v2842_v63  ;;  %v2954_v63 = vld [vmem:[%s3729_s9 + $0x30] sm:$0xff]  }
 0x3c7   : > { %2615 = vmatprep.subr.bf16.mxu1 %v2941_v50 }
 0x3c9   : > { %1368 = vmatmul.mubr.bf16.vlgmr.msra.gmra.mrb[12].mxu1 %v993_v0  ;;  %v2955_v0 = vld [vmem:[%s3729_s9 + $0x78] sm:$0xff]  }
 0x3ca   : > { %2616 = vmatpush3.bf16.msra.mxu1 %v2942_v51 }
 0x3cb   : > { %2617 = vmatprep.subr.bf16.mxu1 %v2943_v52 }
 0x3ce   : > { %2618 = vmatpush3.bf16.msra.mxu1 %v2944_v53 }
 0x3cf   : > { %2619 = vmatprep.subr.bf16.mxu1 %v2945_v54 }
 0x3d2   : > { %2620 = vmatpush3.bf16.msra.mxu1 %v2946_v55 }
 0x3d3   : > { %2621 = vmatprep.subr.bf16.mxu1 %v2947_v56 }
 0x3d6   : > { %2622 = vmatpush3.bf16.msra.mxu1 %v2948_v57 }
 0x3d7   : > { %2623 = vmatprep.subr.bf16.mxu1 %v2949_v58 }
 0x3da   : > { %2624 = vmatpush3.bf16.msra.mxu1 %v2950_v59 }
 0x3db   : > { %2625 = vmatprep.subr.bf16.mxu1 %v2951_v60 }
 0x3de   : > { %2626 = vmatpush3.bf16.msra.mxu1 %v2952_v61 }
 0x3df   : > { %2627 = vmatprep.subr.bf16.mxu1 %v2953_v62 }
 0x3e2   : > { %2628 = vmatpush3.bf16.msra.mxu1 %v2954_v63 }
 0x3e3   : > { %2629 = vmatprep.subr.bf16.mxu1 %v2955_v0 }
 0x3e6   : > { %2630 = vmatpush3.bf16.msra.mxu1 %v2956_v3  ;;  %v2958_v3 = vld [vmem:[%s3729_s9 + $0x80] sm:$0xff]  }
 0x3e7   : > { %2637 = vmatprep.subr.bf16.mxu1 %v2957_v4 }
 0x49c   : > { %v1369_v11 = vpop.f32.mrb[12].mxu1 }
 0x49d   : > { %v2723_v12 = vadd.f32 %v1369_v11, %v1047_v9  ;;  %v1371_v15 = vpop.f32.mrb[13].mxu1  ;;  %v1451_v9 = vrot.slane %v3637_v5, %v1050_v8 }
 0x49e   : > { %v2724_v16 = vadd.f32 %v1371_v15, %v1051_v10  ;;  %v1373_v17 = vpop.f32.mrb[14].mxu1 }
 0x49f   : > { %v1374_v18 = vpop.f32.mrb[15].mxu1  ;;  %v3489_v21 = vpack.c.bf16 %v2723_v12, %v2723_v12 }
 0x4a0   : > { %v1377_v19 = vpack.c.bf16 %v2724_v16, %v2724_v16 }
 0x4a2   : > { %1816 = vmatprep.mubr.bf16.mxu0 %v1377_v19 }
 0x4a3   : > { %1817 = vmatmul.mubr.bf16.vlgmr.msra.gmra.mrb[16].mxu0 %v3489_v21 }
 0x4a4   : > { %1826 = vmatpush1.bf16.msra.mxu0 %v2893_v20  ;;  %1857 = vmatprep.mubr.bf16.mxu0 %v1377_v19 }
 0x4a5   : > { %1827 = vmatprep.subr.bf16.mxu0 %v2898_v1 }
 0x4a8   : > { %1828 = vmatpush1.bf16.msra.mxu0 %v2896_v22 }
 0x4a9   : > { %1829 = vmatprep.subr.bf16.mxu0 %v2901_v23 }
 0x4ac   : > { %1830 = vmatpush1.bf16.msra.mxu0 %v2899_v24 }
 0x4ad   : > { %1831 = vmatprep.subr.bf16.mxu0 %v2904_v25 }
 0x4b0   : > { %1832 = vmatpush1.bf16.msra.mxu0 %v2902_v26 }
 0x4b1   : > { %1833 = vmatprep.subr.bf16.mxu0 %v2907_v27 }
 0x4b4   : > { %1834 = vmatpush1.bf16.msra.mxu0 %v2905_v28 }
 0x4b5   : > { %1835 = vmatprep.subr.bf16.mxu0 %v2910_v29 }
 0x4b8   : > { %1836 = vmatpush1.bf16.msra.mxu0 %v2908_v30 }
 0x4b9   : > { %1837 = vmatprep.subr.bf16.mxu0 %v2913_v31 }
 0x4bc   : > { %1838 = vmatpush1.bf16.msra.mxu0 %v2911_v33 }
 0x4bd   : > { %1839 = vmatprep.subr.bf16.mxu0 %v2916_v34 }
 0x4c0   : > { %1840 = vmatpush1.bf16.msra.mxu0 %v2914_v35 }
 0x4c1   : > { %1841 = vmatprep.subr.bf16.mxu0 %v2919_v36 }
 0x4c4   : > { %1842 = vmatpush1.bf16.msra.mxu0 %v2917_v37 }
 0x4c5   : > { %1843 = vmatprep.subr.bf16.mxu0 %v2922_v38 }
 0x4c8   : > { %1844 = vmatpush1.bf16.msra.mxu0 %v2920_v39 }
 0x4c9   : > { %1845 = vmatprep.subr.bf16.mxu0 %v2925_v40 }
 0x4cc   : > { %1846 = vmatpush1.bf16.msra.mxu0 %v2923_v41 }
 0x4cd   : > { %1847 = vmatprep.subr.bf16.mxu0 %v2928_v42 }
 0x4d0   : > { %1848 = vmatpush1.bf16.msra.mxu0 %v2926_v43 }
 0x4d1   : > { %1849 = vmatprep.subr.bf16.mxu0 %v2931_v44 }
 0x4d4   : > { %1850 = vmatpush1.bf16.msra.mxu0 %v2929_v45 }
 0x4d5   : > { %1851 = vmatprep.subr.bf16.mxu0 %v2934_v13 }
 0x4d8   : > { %1852 = vmatpush1.bf16.msra.mxu0 %v2932_v14 }
 0x4d9   : > { %1853 = vmatprep.subr.bf16.mxu0 %v2937_v46 }
 0x4dc   : > { %1854 = vmatpush1.bf16.msra.mxu0 %v2935_v47 }
 0x4dd   : > { %1855 = vmatprep.subr.bf16.mxu0 %v2940_v48 }
 0x4e0   : > { %1856 = vmatpush1.bf16.msra.mxu0 %v2938_v49 }
 0x4e3   : > { %1858 = vmatmul.mubr.bf16.vlgmr.msra.gmra.mrb[20].mxu0 %v3489_v21 }
 0x576   : > { %v1818_v10 = vpop.f32.mrb[16].mxu0 }
 0x577   : > { %v1819_v11 = vadd.f32 %v1818_v10, %v1447_v7  ;;  %v1820_v12 = vpop.f32.mrb[17].mxu0  ;;  %v2959_v7 = vld [vmem:[%s3729_s9 + $0xc8] sm:$0xff]   ;;  %v2961_v10 = vld [vmem:[%s3729_s9 + $0xd0] sm:$0xff]  }
 0x578   : > { %v1821_v15 = vadd.f32 %v1820_v12, %v1451_v9  ;;  %v1822_v16 = vpop.f32.mrb[18].mxu0  ;;  %v2960_v9 = vld [vmem:[%s3729_s9 + $0x88] sm:$0xff]   ;;  %v1458_v12 = vsub.s32 3, %v3079_v2 }
 0x579   : > { %v1870_v17 = vmul.f32 0.70710677, %v1819_v11  ;;  %v1823_v18 = vpop.f32.mrb[19].mxu0  ;;  %v1866_v58 = vmul.f32 0.5, %v1819_v11  ;;  %v1454_v11 = vsub.s32 2, %v3079_v2  ;;  %v2963_v16 = vld [vmem:[%s3729_s9 + $0xd8] sm:$0xff]  }
 0x57a   : > { %v1871_v19 = vmul.f32 0.70710677, %v1821_v15  ;;  %v1867_v60 = vmul.f32 0.5, %v1821_v15  ;;  %v2962_v15 = vld [vmem:[%s3729_s9 + $0x90] sm:$0xff]   ;;  %v1459_v18 = vrot.slane %v3637_v5, %v1458_v12 }
 0x57b   : > { %v1882_v20 = vand.u32 2147483647, %v1870_v17  ;;  %vm1874_vm6 = vcmp.ge.f32.partialorder %v1870_v17, 0.0  ;;  %v1455_v17 = vrot.slane %v3637_v5, %v1454_v11 }
 0x57c   : > { %v1883_v21 = vand.u32 2147483647, %v1871_v19  ;;  %vm1875_vm7 = vcmp.ge.f32.partialorder %v1871_v19, 0.0  ;;  %v1878_v53 = vsel %vm1874_vm6, 1.0, %v3003_v32  ;;  %v2964_v19 = vld [vmem:[%s3729_s9 + $0x98] sm:$0xff]  }
 0x57d   : > { %v1886_v1 = vmul.f32 0.3275911, %v1882_v20  ;;  %v1934_v6 = vsub.f32 0.0, %v1882_v20  ;;  %v1879_v56 = vsel %vm1875_vm7, 1.0, %v3003_v32 }
 0x57e   : > { %v1887_v22 = vmul.f32 0.3275911, %v1883_v21  ;;  %v1935_v25 = vsub.f32 0.0, %v1883_v21 }
 0x57f   : > { %v1890_v23 = vadd.f32 1.0, %v1886_v1  ;;  %v1938_v8 = vmul.f32 %v1934_v6, %v1882_v20  ;;  %v2965_v20 = vld [vmem:[%s3729_s9 + $0xe0] sm:$0xff]  }
 0x580   : > { %v1891_v24 = vadd.f32 1.0, %v1887_v22  ;;  %v1939_v29 = vmul.f32 %v1935_v25, %v1883_v21  ;;  %v2966_v6 = vld [vmem:[%s3729_s9 + $0xa0] sm:$0xff]  }
 0x581   : > { %2977 = vrcp.f32 %v1890_v23  ;;  %v1942_v33 = vmul.f32 1.442695, %v1938_v8 }
 0x582   : > { %2979 = vrcp.f32 %v1891_v24  ;;  %v1944_v36 = vmul.f32 1.442695, %v1939_v29  ;;  %v2968_v29 = vld [vmem:[%s3729_s9 + $0xa8] sm:$0xff]  }
 0x583   : > { %2981 = vpow2.f32 %v1942_v33 }
 0x584   : > { %2983 = vpow2.f32 %v1944_v36  ;;  %v2971_v36 = vld [vmem:[%s3729_s9 + $0xf8] sm:$0xff]  }
 0x58b   : > { %v2978_v26 = vpop.eup %2977 }
 0x58c   : > { %v2980_v27 = vpop.eup %2979  ;;  %v1898_v28 = vmul.f32 1.0614054, %v2978_v26 }
 0x58d   : > { %v1899_v30 = vmul.f32 1.0614054, %v2980_v27  ;;  %v2982_v47 = vpop.eup %2981 }
 0x58e   : > { %v1902_v31 = vadd.f32 -1.4531521, %v1898_v28  ;;  %v2984_v49 = vpop.eup %2983 }
 0x58f   : > { %v1903_v34 = vadd.f32 -1.4531521, %v1899_v30 }
 0x590   : > { %v1906_v35 = vmul.f32 %v2978_v26, %v1902_v31  ;;  %v2969_v31 = vld [vmem:[%s3729_s9 + $0xf0] sm:$0xff]  }
 0x591   : > { %v1907_v37 = vmul.f32 %v2980_v27, %v1903_v34 }
 0x592   : > { %v1910_v38 = vadd.f32 1.4214138, %v1906_v35  ;;  %v2970_v35 = vld [vmem:[%s3729_s9 + $0xb0] sm:$0xff]  }
 0x593   : > { %v1911_v39 = vadd.f32 1.4214138, %v1907_v37  ;;  %v2972_v37 = vld [vmem:[%s3729_s9 + $0xb8] sm:$0xff]  }
 0x594   : > { %v1914_v40 = vmul.f32 %v2978_v26, %v1910_v38 }
 0x595   : > { %v1915_v41 = vmul.f32 %v2980_v27, %v1911_v39 }
 0x596   : > { %v1918_v42 = vadd.f32 -0.28449672, %v1914_v40 }
 0x597   : > { %v1919_v43 = vadd.f32 -0.28449672, %v1915_v41 }
 0x598   : > { %v1922_v44 = vmul.f32 %v2978_v26, %v1918_v42 }
 0x599   : > { %v1923_v45 = vmul.f32 %v2980_v27, %v1919_v43 }
 0x59a   : > { %v1926_v13 = vadd.f32 0.2548296, %v1922_v44 }
 0x59b   : > { %v1927_v14 = vadd.f32 0.2548296, %v1923_v45 }
 0x59c   : > { %v1930_v46 = vmul.f32 %v2978_v26, %v1926_v13  ;;  %v2967_v26 = vld [vmem:[%s3729_s9 + $0xe8] sm:$0xff]  }
 0x59d   : > { %v1931_v48 = vmul.f32 %v2980_v27, %v1927_v14 }
 0x59e   : > { %v1950_v50 = vmul.f32 %v2982_v47, %v1930_v46 }
 0x59f   : > { %v1951_v51 = vmul.f32 %v2984_v49, %v1931_v48 }
 0x5a0   : > { %v1954_v52 = vsub.f32 1.0, %v1950_v50 }
 0x5a1   : > { %v1955_v54 = vsub.f32 1.0, %v1951_v51 }
 0x5a2   : > { %v1958_v55 = vmul.f32 %v1954_v52, %v1878_v53 }
 0x5a3   : > { %v1959_v57 = vmul.f32 %v1955_v54, %v1879_v56 }
 0x5a4   : > { %v1962_v59 = vadd.f32 1.0, %v1958_v55 }
 0x5a5   : > { %v1963_v61 = vadd.f32 1.0, %v1959_v57 }
 0x5a6   : > { %v1966_v62 = vmul.f32 %v1962_v59, %v1866_v58 }
 0x5a7   : > { %v1967_v63 = vmul.f32 %v1963_v61, %v1867_v60 }
 0x5a8   : > { %v1970_v4 = vpack.c.bf16 %v1966_v62, %v1966_v62 }
 0x5a9   : > { %v1971_v0 = vpack.c.bf16 %v1967_v63, %v1967_v63 }
 0x5ab   : > { %2269 = vmatprep.mubr.bf16.mxu1 %v1971_v0 }
 0x5ac   : > { %2270 = vmatmul.mubr.bf16.vlgmr.msra.gmra.mrb[16].mxu1 %v1970_v4 }
 0x5ad   : > { %2638 = vmatpush3.bf16.msra.mxu1 %v2958_v3 }
 0x5ae   : > { %2639 = vmatprep.subr.bf16.mxu1 %v2959_v7 }
 0x5b1   : > { %2640 = vmatpush3.bf16.msra.mxu1 %v2960_v9 }
 0x5b2   : > { %2641 = vmatprep.subr.bf16.mxu1 %v2961_v10 }
 0x5b5   : > { %2642 = vmatpush3.bf16.msra.mxu1 %v2962_v15 }
 0x5b6   : > { %v1859_v2 = vpop.f32.mrb[20].mxu0  ;;  %2643 = vmatprep.subr.bf16.mxu1 %v2963_v16 }
 0x5b7   : > { %v3675_v21 = vadd.f32 %v1859_v2, %v1455_v17  ;;  %v1861_v1 = vpop.f32.mrb[21].mxu0 }
 0x5b8   : > { %v3677_v22 = vadd.f32 %v1861_v1, %v1459_v18  ;;  %v1863_v23 = vpop.f32.mrb[22].mxu0 }
 0x5b9   : > { %v3680_v24 = vmul.f32 0.70710677, %v3675_v21  ;;  %v1864_v5 = vpop.f32.mrb[23].mxu0  ;;  %2644 = vmatpush3.bf16.msra.mxu1 %v2964_v19  ;;  %v1868_v15 = vmul.f32 0.5, %v3675_v21 }
 0x5ba   : > { %v1873_v25 = vmul.f32 0.70710677, %v3677_v22  ;;  %2645 = vmatprep.subr.bf16.mxu1 %v2965_v20  ;;  %v1869_v17 = vmul.f32 0.5, %v3677_v22 }
 0x5bb   : > { %v1884_v8 = vand.u32 2147483647, %v3680_v24  ;;  %vm1876_vm8 = vcmp.ge.f32.partialorder %v3680_v24, 0.0 }
 0x5bc   : > { %v1885_v27 = vand.u32 2147483647, %v1873_v25  ;;  %vm1877_vm9 = vcmp.ge.f32.partialorder %v1873_v25, 0.0  ;;  %v1880_v7 = vsel %vm1876_vm8, 1.0, %v3003_v32 }
 0x5bd   : > { %v1888_v28 = vmul.f32 0.3275911, %v1884_v8  ;;  %2646 = vmatpush3.bf16.msra.mxu1 %v2966_v6  ;;  %v1936_v38 = vsub.f32 0.0, %v1884_v8  ;;  %v1881_v11 = vsel %vm1877_vm9, 1.0, %v3003_v32  ;;  %v2532_v32 = vld [vmem:[%s3730_s10] ss:$0 sm:$0xff] }
 0x5be   : > { %v1889_v30 = vmul.f32 0.3275911, %v1885_v27  ;;  %2647 = vmatprep.subr.bf16.mxu1 %v2967_v26  ;;  %v1937_v39 = vsub.f32 0.0, %v1885_v27 }
 0x5bf   : > { %v1892_v33 = vadd.f32 1.0, %v1888_v28  ;;  %v1940_v41 = vmul.f32 %v1936_v38, %v1884_v8 }
 0x5c0   : > { %v1893_v34 = vadd.f32 1.0, %v1889_v30  ;;  %v1941_v44 = vmul.f32 %v1937_v39, %v1885_v27 }
 0x5c1   : > { %2985 = vrcp.f32 %v1892_v33  ;;  %2648 = vmatpush3.bf16.msra.mxu1 %v2968_v29  ;;  %v1946_v14 = vmul.f32 1.442695, %v1940_v41 }
 0x5c2   : > { %2987 = vrcp.f32 %v1893_v34  ;;  %2649 = vmatprep.subr.bf16.mxu1 %v2969_v31  ;;  %v1948_v48 = vmul.f32 1.442695, %v1941_v44 }
 0x5c3   : > { %2989 = vpow2.f32 %v1946_v14 }
 0x5c4   : > { %2991 = vpow2.f32 %v1948_v48 }
 0x5c5   : > { %2650 = vmatpush3.bf16.msra.mxu1 %v2970_v35 }
 0x5c6   : > { %2651 = vmatprep.subr.bf16.mxu1 %v2971_v36 }
 0x5c9   : > { %2652 = vmatpush3.bf16.msra.mxu1 %v2972_v37 }
 0x5cb   : > { %v2986_v40 = vpop.eup %2985 }
 0x5cc   : > { %v2988_v42 = vpop.eup %2987  ;;  %v1900_v43 = vmul.f32 1.0614054, %v2986_v40 }
 0x5cd   : > { %v1901_v45 = vmul.f32 1.0614054, %v2988_v42  ;;  %v2990_v61 = vpop.eup %2989 }
 0x5ce   : > { %v1904_v13 = vadd.f32 -1.4531521, %v1900_v43  ;;  %v2992_v63 = vpop.eup %2991 }
 0x5cf   : > { %v1905_v46 = vadd.f32 -1.4531521, %v1901_v45 }
 0x5d0   : > { %v1908_v47 = vmul.f32 %v2986_v40, %v1904_v13 }
 0x5d1   : > { %v1909_v49 = vmul.f32 %v2988_v42, %v1905_v46 }
 0x5d2   : > { %v1912_v50 = vadd.f32 1.4214138, %v1908_v47 }
 0x5d3   : > { %v1913_v51 = vadd.f32 1.4214138, %v1909_v49 }
 0x5d4   : > { %v1916_v52 = vmul.f32 %v2986_v40, %v1912_v50 }
 0x5d5   : > { %v1917_v53 = vmul.f32 %v2988_v42, %v1913_v51 }
 0x5d6   : > { %v1920_v54 = vadd.f32 -0.28449672, %v1916_v52 }
 0x5d7   : > { %v1921_v55 = vadd.f32 -0.28449672, %v1917_v53 }
 0x5d8   : > { %v1924_v56 = vmul.f32 %v2986_v40, %v1920_v54 }
 0x5d9   : > { %v1925_v57 = vmul.f32 %v2988_v42, %v1921_v55 }
 0x5da   : > { %v1928_v58 = vadd.f32 0.2548296, %v1924_v56 }
 0x5db   : > { %v1929_v59 = vadd.f32 0.2548296, %v1925_v57 }
 0x5dc   : > { %v1932_v60 = vmul.f32 %v2986_v40, %v1928_v58 }
 0x5dd   : > { %v1933_v62 = vmul.f32 %v2988_v42, %v1929_v59 }
 0x5de   : > { %v1952_v0 = vmul.f32 %v2990_v61, %v1932_v60 }
 0x5df   : > { %v1953_v3 = vmul.f32 %v2992_v63, %v1933_v62 }
 0x5e0   : > { %v1956_v4 = vsub.f32 1.0, %v1952_v0 }
 0x5e1   : > { %v1957_v9 = vsub.f32 1.0, %v1953_v3 }
 0x5e2   : > { %v1960_v10 = vmul.f32 %v1956_v4, %v1880_v7 }
 0x5e3   : > { %v1961_v12 = vmul.f32 %v1957_v9, %v1881_v11 }
 0x5e4   : > { %v1964_v16 = vadd.f32 1.0, %v1960_v10 }
 0x5e5   : > { %v1965_v18 = vadd.f32 1.0, %v1961_v12 }
 0x5e6   : > { %v1968_v19 = vmul.f32 %v1964_v16, %v1868_v15 }
 0x5e7   : > { %v1969_v2 = vmul.f32 %v1965_v18, %v1869_v17 }
 0x5e8   : > { %v1972_v1 = vpack.c.bf16 %v1968_v19, %v1968_v19 }
 0x5e9   : > { %v1973_v20 = vpack.c.bf16 %v1969_v2, %v1969_v2 }
 0x5eb   : > { %2309 = vmatprep.mubr.bf16.mxu1 %v1973_v20 }
 0x5ec   : > { %2310 = vmatmul.mubr.bf16.vlgmr.msra.gmra.mrb[20].mxu1 %v1972_v1 }
 0x67f   : > { %v2631_v23 = vpop.f32.mrb[16].mxu1 }
 0x680   : > { %v2632_v24 = vpop.f32.mrb[17].mxu1 }
 0x681   : > { %v2633_v5 = vadd.f32 %v2632_v24, %v2631_v23  ;;  %v2634_v6 = vpop.f32.mrb[18].mxu1 }
 0x682   : > { %v2635_v25 = vpop.f32.mrb[19].mxu1 }
 0x683   : > { %v2272_v22 = vadd.f32 %v2633_v5, %v2532_v32 }
 0x6bf   : > { %v2653_v21 = vpop.f32.mrb[20].mxu1 }
 0x6c0   : > { %v2654_v26 = vpop.f32.mrb[21].mxu1 }
 0x6c1   : > { %v2655_v8 = vadd.f32 %v2654_v26, %v2653_v21  ;;  %v2656_v27 = vpop.f32.mrb[22].mxu1 }
 0x6c2   : > { %v2657_v28 = vpop.f32.mrb[23].mxu1 }
 0x6c3   : > { %v2312_v29 = vadd.f32 %v2655_v8, %v2272_v22 }
 0x6c5   : > { %2318 = vst.msk [vmem:[%s381_s12] sm:$0xff] %vm2317_vm10, %v2312_v29 }
 0x6c6 PF: > { %s21_s17 = sadd.s32 1, %s2999_s17  }
 0x6c7   : > { %p18_p4 = scmp.ge.s32.totalorder %s21_s17, 4  }
 0x6c9   :  { %20 = sbr.rel (!%p18_p4) target bundleno = 1 (0x1), region = 94 }

</bundles_post_ra>
